<compile_context>
chip_gen: v7x
topology: tpu7x:2x2x1
jax: 0.10.0
libtpu: 0.0.40
codegen_flags: <defaults>
</compile_context>

<pallas_src>
import functools

import jax
import jax.numpy as jnp
from jax.experimental import pallas as pl
from jax.experimental.pallas import tpu as pltpu


# ----------------------------------------------------------------------------
# Kernels
# ----------------------------------------------------------------------------
def _ffn_resident_kernel(x_ref, w1_ref, b1_ref, w2_ref, b2_ref, o_ref):
    # x_ref : (tm, d_in)     native dtype row tile (cast to bf16 in-kernel)
    # w1_ref: (d_in, d_hid)  bf16, VMEM-resident (constant index_map)
    # b1_ref: (1, d_hid)     f32
    # w2_ref: (d_hid, d_out) bf16, VMEM-resident
    # b2_ref: (1, d_out)     f32
    # o_ref : (tm, d_out)
    x = x_ref[...].astype(w1_ref.dtype)
    h = jnp.dot(x, w1_ref[...], preferred_element_type=jnp.float32)
    h = jnp.maximum(h + b1_ref[...], 0.0)
    y = jnp.dot(h.astype(w2_ref.dtype), w2_ref[...],
                preferred_element_type=jnp.float32)
    o_ref[...] = (y + b2_ref[...]).astype(o_ref.dtype)


def _ffn_streamed_kernel(x_ref, w1_ref, b1_ref, w2_ref, b2_ref, o_ref, acc_ref):
    # Hidden dim chunked on grid axis 1 ("arbitrary"); f32 VMEM accumulator.
    k = pl.program_id(1)

    @pl.when(k == 0)
    def _init():
        acc_ref[...] = jnp.zeros_like(acc_ref)

    x = x_ref[...].astype(w1_ref.dtype)
    h = jnp.dot(x, w1_ref[...], preferred_element_type=jnp.float32)
    h = jnp.maximum(h + b1_ref[...], 0.0)
    acc_ref[...] += jnp.dot(h.astype(w2_ref.dtype), w2_ref[...],
                            preferred_element_type=jnp.float32)

    @pl.when(k == pl.num_programs(1) - 1)
    def _finalize():
        o_ref[...] = (acc_ref[...] + b2_ref[...]).astype(o_ref.dtype)


# ----------------------------------------------------------------------------
# Helpers
# ----------------------------------------------------------------------------
@functools.lru_cache(maxsize=1)
def _vmem_capacity_bytes():
    """Per-core VMEM capacity (64 MiB on v7x, 128 MiB on v5e/v6e)."""
    try:
        cap = int(getattr(pltpu.get_tpu_info(), "vmem_capacity_bytes", 0))
        if cap > 0:
            return cap
    except Exception:
        pass
    return 64 * 1024 * 1024  # conservative fallback (v7x per-TC)


def _round_row_tile(tm):
    """Row tile: 256-aligned (v6e/v7x MXU), 128 minimum, capped at 1024."""
    tm = int(max(128, min(tm, 1024)))
    align = 256 if tm >= 256 else 128
    return (tm // align) * align


def _pick_hidden_chunk(d_hid, tk_req):
    """Largest 256-aligned (fallback 128) divisor of d_hid that is <= tk_req."""
    if d_hid % 128 != 0 or d_hid <= 256:
        return d_hid
    for align in (256, 128):
        if d_hid % align != 0:
            continue
        tk = max(align, (min(tk_req, d_hid) // align) * align)
        while tk >= align:
            if d_hid % tk == 0:
                return tk
            tk -= align
    return d_hid


# ----------------------------------------------------------------------------
# Wrapper
# ----------------------------------------------------------------------------
@functools.partial(jax.jit, static_argnames=("tm", "tk", "compute_dtype",
                                             "out_dtype", "weights_resident"))
def position_wise_ffn(x, w1, b1, w2, b2, *, tm=256, tk=512,
                      compute_dtype=jnp.bfloat16, out_dtype=None,
                      weights_resident=None):
    """x: (..., d_in) -> (..., d_out), matching PyTorch PositionWiseFFN.

    Weights are stored transposed vs. PyTorch: w1:(d_in,d_hid), w2:(d_hid,d_out).
    Pass w1/w2 already in `compute_dtype` (bf16) to avoid a per-call cast pass.
    """
    *lead, d_in = x.shape
    d_hid = w1.shape[1]
    d_out = w2.shape[1]
    out_dtype = x.dtype if out_dtype is None else jnp.dtype(out_dtype)

    m = 1
    for s in lead:
        m *= s

    tm = _round_row_tile(tm)
    m_pad = pl.cdiv(m, tm) * tm
    n_rows = m_pad // tm

    x2 = x.reshape(m, d_in)
    if m_pad != m:
        x2 = jnp.pad(x2, ((0, m_pad - m), (0, 0)))

    # Weights are ideally pre-cast once at parameter setup; only cast if needed.
    w1c = w1 if w1.dtype == compute_dtype else w1.astype(compute_dtype)
    w2c = w2 if w2.dtype == compute_dtype else w2.astype(compute_dtype)
    b1_2d = b1.reshape(1, d_hid).astype(jnp.float32)
    b2_2d = b2.reshape(1, d_out).astype(jnp.float32)

    x_b = jnp.dtype(x2.dtype).itemsize
    w_b = jnp.dtype(compute_dtype).itemsize
    o_b = jnp.dtype(out_dtype).itemsize

    cap = _vmem_capacity_bytes()
    # Conservative (double-buffered) VMEM estimate for the resident path.
    resident_vmem = (2 * (d_in * d_hid + d_hid * d_out) * w_b
                     + 2 * (d_hid + d_out) * 4
                     + 2 * tm * d_in * x_b
                     + 2 * tm * d_out * o_b)
    if weights_resident is None:
        weights_resident = resident_vmem <= int(0.6 * cap)

    flops = 2 * m_pad * d_in * d_hid + 2 * m_pad * d_hid * d_out

    if weights_resident:
        # Weights DMA'd once, stay in VMEM across all row tiles.
        est_vmem = resident_vmem
        grid = (n_rows,)
        grid_spec = pltpu.PrefetchScalarGridSpec(
            num_scalar_prefetch=0,
            grid=grid,
            in_specs=[
                pl.BlockSpec((tm, d_in), lambda i: (i, 0)),      # x row tile
                pl.BlockSpec((d_in, d_hid), lambda i: (0, 0)),   # W1 resident
                pl.BlockSpec((1, d_hid), lambda i: (0, 0)),      # b1 resident
                pl.BlockSpec((d_hid, d_out), lambda i: (0, 0)),  # W2 resident
                pl.BlockSpec((1, d_out), lambda i: (0, 0)),      # b2 resident
            ],
            out_specs=pl.BlockSpec((tm, d_out), lambda i: (i, 0)),
        )
        kernel = _ffn_resident_kernel
        dim_sems = ("parallel",)
        weight_reads = 1
    else:
        # Streamed weights: chunk the hidden dim on a trailing reduction axis.
        tk = _pick_hidden_chunk(d_hid, tk)
        est_vmem = (2 * tm * d_in * x_b
                    + 2 * (d_in * tk + tk * d_out) * w_b
                    + 2 * (tk + d_out) * 4
                    + 2 * tm * d_out * o_b
                    + tm * d_out * 4)
        grid = (n_rows, d_hid // tk)
        grid_spec = pltpu.PrefetchScalarGridSpec(
            num_scalar_prefetch=0,
            grid=grid,
            in_specs=[
                pl.BlockSpec((tm, d_in), lambda i, k: (i, 0)),    # x row tile
                pl.BlockSpec((d_in, tk), lambda i, k: (0, k)),    # W1 chunk
                pl.BlockSpec((1, tk), lambda i, k: (0, k)),       # b1 chunk
                pl.BlockSpec((tk, d_out), lambda i, k: (k, 0)),   # W2 chunk
                pl.BlockSpec((1, d_out), lambda i, k: (0, 0)),    # b2
            ],
            out_specs=pl.BlockSpec((tm, d_out), lambda i, k: (i, 0)),
            scratch_shapes=[pltpu.VMEM((tm, d_out), jnp.float32)],
        )
        kernel = _ffn_streamed_kernel
        dim_sems = ("parallel", "arbitrary")
        weight_reads = n_rows  # weight chunks are re-streamed per row tile

    cost = pl.CostEstimate(
        flops=flops,
        transcendentals=0,
        bytes_accessed=(m_pad * d_in * x_b
                        + weight_reads * (d_in * d_hid + d_hid * d_out) * w_b
                        + (d_hid + d_out) * 4
                        + m_pad * d_out * o_b),
    )

    vmem_limit = int(min(0.9 * cap, max(48 * 1024 * 1024, 1.5 * est_vmem)))

    out = pl.pallas_call(
        kernel,
        out_shape=jax.ShapeDtypeStruct((m_pad, d_out), out_dtype),
        grid_spec=grid_spec,
        compiler_params=pltpu.CompilerParams(
            dimension_semantics=dim_sems,
            vmem_limit_bytes=vmem_limit,
        ),
        cost_estimate=cost,
    )(x2, w1c, b1_2d, w2c, b2_2d)

    if m_pad != m:
        out = out[:m]
    return out.reshape(*lead, d_out)


# ----------------------------------------------------------------------------
# Demo / self-test
# ----------------------------------------------------------------------------
if __name__ == "__main__":
    # Small (but tiling-exercising) config: m=512 rows -> 2 row tiles at tm=256.
    batch, seq = 4, 128
    ffn_num_input, ffn_num_hiddens, ffn_num_output = 256, 512, 256

    key = jax.random.PRNGKey(0)
    kx, kw1, kb1, kw2, kb2 = jax.random.split(key, 5)

    x = jax.random.normal(kx, (batch, seq, ffn_num_input), dtype=jnp.float32)

    bound1 = 1.0 / (ffn_num_input ** 0.5)
    w1 = jax.random.uniform(kw1, (ffn_num_input, ffn_num_hiddens),
                            minval=-bound1, maxval=bound1, dtype=jnp.float32)
    b1 = jax.random.uniform(kb1, (ffn_num_hiddens,),
                            minval=-bound1, maxval=bound1, dtype=jnp.float32)
    bound2 = 1.0 / (ffn_num_hiddens ** 0.5)
    w2 = jax.random.uniform(kw2, (ffn_num_hiddens, ffn_num_output),
                            minval=-bound2, maxval=bound2, dtype=jnp.float32)
    b2 = jax.random.uniform(kb2, (ffn_num_output,),
                            minval=-bound2, maxval=bound2, dtype=jnp.float32)

    # Parameter setup: persist weights in bf16 ONCE (no per-call cast pass).
    w1_c = w1.astype(jnp.bfloat16)
    w2_c = w2.astype(jnp.bfloat16)

    def ref_ffn_bf16(xx):
        """Reference with the same bf16-input / f32-accumulate arithmetic."""
        b, s, _ = xx.shape
        x2 = xx.reshape(b * s, ffn_num_input).astype(jnp.bfloat16)
        h = jnp.dot(x2, w1_c, preferred_element_type=jnp.float32)
        h = jnp.maximum(h + b1, 0.0)
        y = jnp.dot(h.astype(jnp.bfloat16), w2_c,
                    preferred_element_type=jnp.float32) + b2
        return y.reshape(b, s, ffn_num_output)

    # 1) Default path: W1/W2 VMEM-resident, grid = (2 row tiles,).
    y = jax.block_until_ready(position_wise_ffn(x, w1_c, b1, w2_c, b2, tm=256))
    assert y.shape == (batch, seq, ffn_num_output) and y.dtype == x.dtype
    assert jnp.allclose(y, ref_ffn_bf16(x), atol=1e-2, rtol=1e-2)

    # 2) Streamed-weight path (forced): grid = (2 row tiles, 2 hidden chunks).
    y_s = jax.block_until_ready(position_wise_ffn(
        x, w1_c, b1, w2_c, b2, tm=256, tk=256, weights_resident=False))
    assert jnp.allclose(y_s, ref_ffn_bf16(x), atol=1e-2, rtol=1e-2)

    # 3) Ragged row count (batch*seq not a multiple of tm) exercises padding.
    x_r = x[:, :100, :]
    y_r = jax.block_until_ready(position_wise_ffn(x_r, w1_c, b1, w2_c, b2,
                                                  tm=256))
    assert y_r.shape == (batch, 100, ffn_num_output)
    assert jnp.allclose(y_r, ref_ffn_bf16(x_r), atol=1e-2, rtol=1e-2)

    # 4) bf16 output (halves writeback when the downstream consumer accepts it).
    y_bf = jax.block_until_ready(position_wise_ffn(
        x, w1_c, b1, w2_c, b2, tm=256, out_dtype=jnp.bfloat16))
    assert y_bf.dtype == jnp.bfloat16
    assert jnp.allclose(y_bf.astype(jnp.float32), ref_ffn_bf16(x),
                        atol=3e-2, rtol=3e-2)

    # Loose sanity check against the pure-f32 math of the PyTorch module.
    # NOTE: the intermediate h is narrowed to bf16 before the second matmul
    # (MXU-native), so only a loose tolerance vs. pure-f32 applies.
    ref_f32 = jnp.maximum(x @ w1 + b1, 0.0) @ w2 + b2
    assert jnp.allclose(y, ref_f32, atol=5e-2, rtol=5e-2)

    print("KERNEL_OK")
</pallas_src>

<mosaic_0001>
module attributes {stable_mosaic.version = 11 : i64} {
  func.func @_ffn_resident_kernel(%arg0: i32, %arg1: memref<256x256xf32, #tpu.memory_space<vmem>>, %arg2: memref<256x512xbf16, #tpu.memory_space<vmem>>, %arg3: memref<1x512xf32, #tpu.memory_space<vmem>>, %arg4: memref<512x256xbf16, #tpu.memory_space<vmem>>, %arg5: memref<1x256xf32, #tpu.memory_space<vmem>>, %arg6: memref<256x256xf32, #tpu.memory_space<vmem>>) attributes {dimension_semantics = [#tpu.dimension_semantics<parallel>], iteration_bounds = array<i64: 2>, scalar_prefetch = 0 : i64, scratch_operands = 0 : i64, tpu.core_type = #tpu.core_type<tc>, window_params = [{transform_indices = @transform_0, window_bounds = array<i64: 256, 256>}, {pipeline_mode = #tpu.pipeline_mode<synchronous>, transform_indices = @transform_1, window_bounds = array<i64: 256, 512>}, {pipeline_mode = #tpu.pipeline_mode<synchronous>, transform_indices = @transform_2, window_bounds = array<i64: 1, 512>}, {pipeline_mode = #tpu.pipeline_mode<synchronous>, transform_indices = @transform_3, window_bounds = array<i64: 512, 256>}, {pipeline_mode = #tpu.pipeline_mode<synchronous>, transform_indices = @transform_4, window_bounds = array<i64: 1, 256>}, {transform_indices = @transform_5, window_bounds = array<i64: 256, 256>}]} {
    %c0 = arith.constant 0 : index
    %c0_0 = arith.constant 0 : index
    %0 = vector.load %arg1[%c0, %c0_0] : memref<256x256xf32, #tpu.memory_space<vmem>>, vector<256x256xf32>
    %1 = arith.truncf %0 : vector<256x256xf32> to vector<256x256xbf16>
    %c0_1 = arith.constant 0 : index
    %c0_2 = arith.constant 0 : index
    %2 = vector.load %arg2[%c0_1, %c0_2] : memref<256x512xbf16, #tpu.memory_space<vmem>>, vector<256x512xbf16>
    %cst = arith.constant dense<0.000000e+00> : vector<256x512xf32>
    %3 = tpu.matmul %1, %2, %cst {dimension_numbers = #tpu.dot_dimension_numbers<[1], [0], [0], [1], [0, 0, 1, 1], [], []>} : vector<256x256xbf16>, vector<256x512xbf16>, vector<256x512xf32> -> vector<256x512xf32>
    %c0_3 = arith.constant 0 : index
    %c0_4 = arith.constant 0 : index
    %4 = vector.load %arg3[%c0_3, %c0_4] : memref<1x512xf32, #tpu.memory_space<vmem>>, vector<1x512xf32>
    %5 = vector.broadcast %4 : vector<1x512xf32> to vector<256x512xf32>
    %6 = arith.addf %3, %5 : vector<256x512xf32>
    %cst_5 = arith.constant 0.000000e+00 : f32
    %7 = vector.broadcast %cst_5 : f32 to vector<256x512xf32>
    %8 = arith.maximumf %6, %7 : vector<256x512xf32>
    %9 = arith.truncf %8 : vector<256x512xf32> to vector<256x512xbf16>
    %c0_6 = arith.constant 0 : index
    %c0_7 = arith.constant 0 : index
    %10 = vector.load %arg4[%c0_6, %c0_7] : memref<512x256xbf16, #tpu.memory_space<vmem>>, vector<512x256xbf16>
    %cst_8 = arith.constant dense<0.000000e+00> : vector<256x256xf32>
    %11 = tpu.matmul %9, %10, %cst_8 {dimension_numbers = #tpu.dot_dimension_numbers<[1], [0], [0], [1], [0, 0, 1, 1], [], []>} : vector<256x512xbf16>, vector<512x256xbf16>, vector<256x256xf32> -> vector<256x256xf32>
    %c0_9 = arith.constant 0 : index
    %c0_10 = arith.constant 0 : index
    %12 = vector.load %arg5[%c0_9, %c0_10] : memref<1x256xf32, #tpu.memory_space<vmem>>, vector<1x256xf32>
    %13 = vector.broadcast %12 : vector<1x256xf32> to vector<256x256xf32>
    %14 = arith.addf %11, %13 : vector<256x256xf32>
    %c0_11 = arith.constant 0 : index
    %c0_12 = arith.constant 0 : index
    %15 = vector.load %arg6[%c0_11, %c0_12] : memref<256x256xf32, #tpu.memory_space<vmem>>, vector<256x256xf32>
    tpu.vector_store %arg6[%c0_11, %c0_12], %14 {strides = array<i32>} : memref<256x256xf32, #tpu.memory_space<vmem>>, vector<256x256xf32>,
    return
  }
  func.func @transform_0(%arg0: i32) -> (i32, i32) {
    %c0_i32 = arith.constant 0 : i32
    %c0_i32_0 = arith.constant 0 : i32
    return %arg0, %c0_i32 : i32, i32
  }
  func.func @transform_1(%arg0: i32) -> (i32, i32) {
    %c0_i32 = arith.constant 0 : i32
    %c0_i32_0 = arith.constant 0 : i32
    %c0_i32_1 = arith.constant 0 : i32
    return %c0_i32, %c0_i32_0 : i32, i32
  }
  func.func @transform_2(%arg0: i32) -> (i32, i32) {
    %c0_i32 = arith.constant 0 : i32
    %c0_i32_0 = arith.constant 0 : i32
    %c0_i32_1 = arith.constant 0 : i32
    return %c0_i32, %c0_i32_0 : i32, i32
  }
  func.func @transform_3(%arg0: i32) -> (i32, i32) {
    %c0_i32 = arith.constant 0 : i32
    %c0_i32_0 = arith.constant 0 : i32
    %c0_i32_1 = arith.constant 0 : i32
    return %c0_i32, %c0_i32_0 : i32, i32
  }
  func.func @transform_4(%arg0: i32) -> (i32, i32) {
    %c0_i32 = arith.constant 0 : i32
    %c0_i32_0 = arith.constant 0 : i32
    %c0_i32_1 = arith.constant 0 : i32
    return %c0_i32, %c0_i32_0 : i32, i32
  }
  func.func @transform_5(%arg0: i32) -> (i32, i32) {
    %c0_i32 = arith.constant 0 : i32
    %c0_i32_0 = arith.constant 0 : i32
    return %arg0, %c0_i32 : i32, i32
  }
}

</mosaic_0001>

<bundles_post_ra>
// kernel: position_wise_ffn.1
= control target key start
LH: loop header
LB: loop body
LE: loop exit
PB: predicated region body
PF: predicated region fallthrough
CT: control target
= control target key end

     0   :  { %10 = vsyncpa [#allocation3], 0  ;;  %s3786_s0 = inlined_call_operand.hbm [shape: f32[512,256], index: 0, kind: input, shape index: {}]   ;;  %s3787_s1 = inlined_call_operand.hbm [shape: bf16[256,512], index: 1, kind: input, shape index: {}]   ;;  %s3788_s2 = inlined_call_operand.vmem [shape: f32[1,512], index: 2, kind: input, shape index: {}]   ;;  %s3789_s3 = inlined_call_operand.hbm [shape: bf16[512,256], index: 3, kind: input, shape index: {}]   ;;  %s3790_s4 = inlined_call_operand.vmem [shape: f32[1,256], index: 4, kind: input, shape index: {}]   ;;  %s3791_s5 = inlined_call_operand.hbm [shape: f32[512,256], index: 5, kind: output, shape index: {}]  }
   0x1   :  { %12 = vsyncpa [#allocation3 + $0x1], 0 }
   0x2   :  { %13 = vsyncpa [#allocation6], 0 }
   0x3   :  { %14 = vsyncpa [#allocation4], 0 }
   0x4   :  { %16 = vsyncpa [#allocation4 + $0x1], 0  ;;  %s3051_s18 = smov 0   ;;  %s3053_s19 = smov 0  }
   0x5   :  { %s3055_s20 = smov 0   ;;  %s3057_s21 = smov 0  }
   0x6 LB: > { %s3072_s22 = sadd.s32 4294967295, %s3009_s21   ;;  %s2308_s23 = sadd.s32 4294967294, %s3009_s21   ;;  %s3009_s21 = sphi %s3057_s21, %s3811_s21   ;;  %s3005_s20 = sphi %s3055_s20, %s3810_s20   ;;  %s3001_s19 = sphi %s3053_s19, %s3809_s19   ;;  %s2997_s18 = sphi %s3051_s18, %s3808_s18  }
   0x7   : > { %p42_p0 = scmp.ne.s32.totalorder %s3001_s19, %s2997_s18  ;;  %p3792_p1 = scmp.eq.s32.totalorder %s3072_s22, 0 }
   0x8   : > { %p156_p3 = scmp.eq.s32.totalorder %s2308_s23, 1  ;;  %p2309_p5 = scmp.ge.s32.totalorder %s3009_s21, 1 }
   0x9   : > { %p3081_p4 = por %p3792_p1, %p42_p0  ;;  %p163_p7 = scmp.lt.s32.totalorder %s3009_s21, 3 }
   0xa   : > { %p3086_p6 = por %p156_p3, %p42_p0  ;;  %s3011_s27 = smov [#allocation5]  }
   0xb   : > { %s3795_s24 = scalar_select %p3081_p4, 1, 0 }
   0xc   : > { %s3796_s25 = scalar_select %p3086_p6, 1, 0 }
   0xd   : > { %p3091_p8 = pnand %p2309_p5, %p163_p7  ;;  %s175_s28 = sshll.u32 %s3011_s27, 4  ;;  %s3095_s28 = int_to_ptr.vmem [resolvable:$true] %s175_s28 }
   0xe   : > { %s3012_s30 = smov [#allocation7]   ;;  %s2853_s9 = scalar_lea.hbm %s3787_s1, 8192 }
   0xf   : > { %p2600_p9 = pneg %p3091_p8  ;;  %s191_s6 = sshll.u32 %s3012_s30, 4  ;;  %s3106_s6 = int_to_ptr.vmem [resolvable:$true] %s191_s6 }
  0x10   : > { %p2854_p12 = scmp.ne.s32.totalorder %s3787_s1, %s2853_s9  ;;  %p2860_p5 = scmp.lt.u32.totalorder %s2853_s9, %s3787_s1 }
  0x11   : > { %p3102_p11 = pnand %p2600_p9, %p3792_p1 }
  0x13   : > { %p2855_p13 = pneg %p3102_p11 }
  0x15   : > { %p2856_p0 = pnand %p2855_p13, %p2854_p12 }
  0x17   : > { %p2857_p3 = pneg %p2856_p0 }
  0x19   : > { %p2862_p7 = pnand %p2860_p5, %p2857_p3 }
  0x1b   : > { %2865 = shalt.err (!%p2862_p7)
}
  0x1c   : > { %s2866_s14 = scalar_lea.vmem %s3095_s28, 8192  ;;  %p2874_p2 = scmp.lt.s32.totalorder %s3095_s28, %s3095_s28 }
  0x1d   : > { %p2867_p9 = scmp.ne.s32.totalorder %s3095_s28, %s2866_s14  ;;  %p2875_p12 = scmp.lt.s32.totalorder %s2866_s14, %s2866_s14 }
  0x1f   : > { %p2869_p10 = pnand %p2867_p9, %p2855_p13  ;;  %p2876_p0 = por %p2875_p12, %p2874_p2 }
  0x21   : > { %p2870_p1 = pneg %p2869_p10 }
  0x23   : > { %p2877_p6 = pnand %p2876_p0, %p2870_p1 }
  0x25   : > { %2880 = shalt.err (!%p2877_p6)
}
  0x26   : > { %s3013_s15 = smov 256   ;;  %s3014_s16 = smov 16  }
  0x27   : > { %2603 = dma.hbm_to_vmem [thread:$0]  (!%p3102_p11), %s3787_s1, 8192, %s3095_s28, [#allocation6], %s3013_s15, %s3013_s15, %s3014_s16  }
  0x28   : > { %s2881_s7 = scalar_lea.hbm %s3789_s3, 8192 }
  0x29   : > { %p2882_p1 = scmp.ne.s32.totalorder %s3789_s3, %s2881_s7  ;;  %p2888_p10 = scmp.lt.u32.totalorder %s2881_s7, %s3789_s3 }
  0x2b   : > { %p2884_p2 = pnand %p2882_p1, %p2855_p13 }
  0x2d   : > { %p2885_p6 = pneg %p2884_p2 }
  0x2f   : > { %p2890_p3 = pnand %p2888_p10, %p2885_p6 }
  0x31   : > { %2893 = shalt.err (!%p2890_p3)
}
  0x32   : > { %s2894_s28 = scalar_lea.vmem %s3106_s6, 8192  ;;  %p2902_p12 = scmp.lt.s32.totalorder %s3106_s6, %s3106_s6 }
  0x33   : > { %p2895_p5 = scmp.ne.s32.totalorder %s3106_s6, %s2894_s28  ;;  %p2903_p0 = scmp.lt.s32.totalorder %s2894_s28, %s2894_s28 }
  0x35   : > { %p2897_p7 = pnand %p2895_p5, %p2855_p13  ;;  %p2904_p1 = por %p2903_p0, %p2902_p12 }
  0x37   : > { %p2898_p9 = pneg %p2897_p7 }
  0x39   : > { %p2905_p2 = pnand %p2904_p1, %p2898_p9 }
  0x3b   : > { %2908 = shalt.err (!%p2905_p2)
}
  0x3c   : > { %s3015_s12 = smov 128   ;;  %s3016_s13 = smov 8  }
  0x3d   : > { %2606 = dma.hbm_to_vmem [thread:$0]  (!%p3102_p11), %s3789_s3, 8192, %s3106_s6, [#allocation6], %s3015_s12, %s3015_s12, %s3016_s13  }
  0x3e   : > { %s3164_s23 = sadd.s32 1, %s3009_s21   ;;  %s29_s30 = sadd.s32 1, %s3005_s20 }
  0x3f   : > { %s26_s27 = ssub.s32 %s3009_s21, %s3164_s23  ;;  %p36_p6 = scmp.ne.s32.totalorder %s3005_s20, %s3001_s19 }
  0x40   : > { %p27_p13 = scmp.eq.s32.totalorder %s26_s27, 0  ;;  %p37_p10 = scmp.eq.s32.totalorder %s3009_s21, 0 }
  0x41   : > { %p3799_p5 = scmp.eq.s32.totalorder %s3072_s22, 1  ;;  %p2617_p9 = scmp.lt.s32.totalorder %s3009_s21, 2 }
  0x42   : > { %s3173_s7 = scalar_select %p27_p13, %s3005_s20, %s29_s30  }
  0x43   : > { %p38_p3 = por %p37_p10, %p36_p6  ;;  %p3177_p7 = por %p3799_p5, %p36_p6 }
  0x44   : > { %s208_s29 = sand.u32 1, %s3005_s20   ;;  %s2457_s6 = sshll.u32 %s3009_s21, 13 }
  0x45   : > { %s3800_s8 = scalar_select %p3177_p7, 1, 0 }
  0x46   : > { %s2313_s9 = sshll.u32 %s208_s29, 9  ;;  %s3187_s28 = scalar_lea.hbm %s3786_s0, %s2457_s6 }
  0x47   : > { %s212_s12 = scalar_lea.vmem [#allocation2], %s2313_s9  ;;  %p3191_p11 = pnand %p2617_p9, %p38_p3 }
  0x48   : > { %s220_s13 = sshll.u32 %s212_s12, 4  ;;  %s3195_s17 = scalar_lea.sflag [#allocation3], %s208_s29  ;;  %s3189_s13 = int_to_ptr.vmem [resolvable:$true] %s220_s13 }
  0x49   : > { %s2909_s27 = scalar_lea.hbm %s3187_s28, 8192  ;;  %p2911_p0 = pneg %p3191_p11 }
  0x4a   : > { %p2910_p12 = scmp.ne.s32.totalorder %s3187_s28, %s2909_s27  ;;  %s2914_s6 = scalar_lea.hbm %s3786_s0, 16384 }
  0x4b   : > { %p2915_p13 = scmp.lt.u32.totalorder %s3187_s28, %s3786_s0  ;;  %p2916_p6 = scmp.lt.u32.totalorder %s2914_s6, %s2909_s27 }
  0x4c   : > { %p2912_p1 = pnand %p2911_p0, %p2910_p12  ;;  %p2918_p3 = scmp.lt.u32.totalorder %s2909_s27, %s3187_s28 }
  0x4d   : > { %p2917_p10 = por %p2916_p6, %p2915_p13 }
  0x4e   : > { %p2913_p2 = pneg %p2912_p1 }
  0x4f   : > { %p2919_p5 = por %p2918_p3, %p2917_p10 }
  0x51   : > { %p2920_p9 = pnand %p2919_p5, %p2913_p2 }
  0x53   : > { %2923 = shalt.err (!%p2920_p9)
}
  0x54   : > { %s2924_s29 = scalar_lea.vmem %s3189_s13, 8192  ;;  %s3017_s12 = smov [#allocation2]  }
  0x55   : > { %p2925_p12 = scmp.ne.s32.totalorder %s3189_s13, %s2924_s29  ;;  %s2929_s30 = sshll.u32 %s3017_s12, 4  ;;  %s2930_s30 = int_to_ptr.vmem [resolvable:$false] %s2929_s30 }
  0x56   : > { %s2931_s9 = scalar_lea.vmem %s2930_s30, 16384  ;;  %p2932_p4 = scmp.lt.s32.totalorder %s3189_s13, %s2930_s30 }
  0x57   : > { %p2927_p1 = pnand %p2925_p12, %p2911_p0  ;;  %p2933_p13 = scmp.lt.s32.totalorder %s2931_s9, %s2924_s29 }
  0x59   : > { %p2928_p7 = pneg %p2927_p1  ;;  %p2934_p6 = por %p2933_p13, %p2932_p4 }
  0x5b   : > { %p2935_p10 = pnand %p2934_p6, %p2928_p7 }
  0x5d   : > { %2938 = shalt.err (!%p2935_p10)
}
  0x5e   : > { %2610 = dma.hbm_to_vmem [thread:$0]  (!%p3191_p11), %s3187_s28, 8192, %s3189_s13, %s3195_s17, %s3013_s15, %s3013_s15, %s3014_s16  }
  0x5f   : > { %232 = sbr.rel (%p3091_p8) target bundleno = 873 (0x369), region = 40  ;;  %s3229_s27 = sand.u32 (!%p3091_p8), 1, %s3001_s19  }
  0x60   : > { %s2318_s6 = sshll.u32 (!%p3091_p8), %s3229_s27, 9  ;;  %s235_s10 = scalar_lea.sflag (!%p3091_p8), [#allocation3], %s3229_s27 }
  0x61   : > { %s3235_s14 = scalar_lea.vmem (!%p3091_p8), [#allocation2], %s2318_s6  ;;  %p3802_p4 = scmp.ne.s32.totalorder (!%p3091_p8), %s3795_s24, 0 }
  0x66   : > { %2984 = dma.done.wait (%p3802_p4), %s235_s10, 8192  }
  0x67   : > { %2986 = vsyncadd (%p3802_p4), %s235_s10, 4294959104  ;;  %p3803_p7 = scmp.eq.s32.totalorder %s3072_s22, 0 }
  0x69   : > { %2988 = dma.done.wait (%p3803_p7), [#allocation6], 16384   ;;  %p3804_p8 = pmov %p3803_p7 }
  0x6a   : > { %v2661_v0 = vld [vmem:[#allocation5 + $0x4] ss:$16 sps:$4 sm:$0xff]   ;;  %v2663_v1 = vld [vmem:[#allocation5] ss:$16 sps:$4 sm:$0xff]   ;;  %v276_v13 = vld [vmem:[%s3235_s14 + $0x8] sm:$0xff]  ;;  %s3607_s28 = scalar_lea.vmem [#allocation8], %s2318_s6 }
  0x6b   : > { %2990 = vsyncadd (%p3804_p8), [#allocation6], 4294950912  ;;  %777 = vmatprep.subr.bf16.mxu1 %v2661_v0  ;;  %v2664_v2 = vld [vmem:[#allocation5 + $0x24] ss:$16 sps:$4 sm:$0xff]   ;;  %v2666_v3 = vld [vmem:[#allocation5 + $0x20] ss:$16 sps:$4 sm:$0xff]  }
  0x6c   : > { %778 = vmatpush1.bf16.msra.mxu1 %v2663_v1  ;;  %v2667_v4 = vld [vmem:[#allocation5 + $0x44] ss:$16 sps:$4 sm:$0xff]   ;;  %v2669_v5 = vld [vmem:[#allocation5 + $0x40] ss:$16 sps:$4 sm:$0xff]   ;;  %v278_v14 = vld [vmem:[%s3235_s14 + $0x18] sm:$0xff]  ;;  %s2459_s13 = sshll.u32 %s3072_s22, 13 }
  0x6d   : > { %779 = vmatprep.subr.bf16.mxu1 %v2664_v2  ;;  %v2670_v6 = vld [vmem:[#allocation5 + $0x64] ss:$16 sps:$4 sm:$0xff]   ;;  %v2672_v7 = vld [vmem:[#allocation5 + $0x60] ss:$16 sps:$4 sm:$0xff]   ;;  %v3247_v15 = vpack.c.bf16 %v278_v14, %v276_v13  ;;  %v2711_v37 = vld [vmem:[#allocation5 + $0xc] ss:$16 sps:$4 sm:$0xff]   ;;  %s3736_s12 = scalar_lea.hbm %s3791_s5, %s2459_s13 }
  0x6e   : > { %v2673_v8 = vld [vmem:[#allocation5 + $0x84] ss:$16 sps:$4 sm:$0xff]   ;;  %v2675_v9 = vld [vmem:[#allocation5 + $0x80] ss:$16 sps:$4 sm:$0xff]   ;;  %v280_v38 = vld [vmem:[%s3235_s14 + $0x28] sm:$0xff]  ;;  %s2216_s17 = sshll.u32 %s3607_s28, 4  ;;  %s3738_s17 = int_to_ptr.vmem [resolvable:$true] %s2216_s17 }
  0x6f   : > { %v2676_v10 = vld [vmem:[#allocation5 + $0xa4] ss:$16 sps:$4 sm:$0xff]   ;;  %v2678_v11 = vld [vmem:[#allocation5 + $0xa0] ss:$16 sps:$4 sm:$0xff]   ;;  %809 = vmatprep.mubr.bf16.mxu1 %v3247_v15  ;;  %v282_v39 = vld [vmem:[%s3235_s14 + $0x38] sm:$0xff]  ;;  %s2202_s22 = scalar_lea.sflag [#allocation4], %s3229_s27 }
  0x70   : > { %780 = vmatpush1.bf16.msra.mxu1 %v2666_v3  ;;  %v2679_v12 = vld [vmem:[#allocation5 + $0xc4] ss:$16 sps:$4 sm:$0xff]   ;;  %v2681_v16 = vld [vmem:[#allocation5 + $0xc0] ss:$16 sps:$4 sm:$0xff]   ;;  %v2709_v41 = vld [vmem:[#allocation5 + $0x8] ss:$16 sps:$4 sm:$0xff]   ;;  %v3256_v42 = vpack.c.bf16 %v282_v39, %v280_v38 }
  0x71   : > { %781 = vmatprep.subr.bf16.mxu1 %v2667_v4  ;;  %v2682_v17 = vld [vmem:[#allocation5 + $0xe4] ss:$16 sps:$4 sm:$0xff]   ;;  %v2684_v18 = vld [vmem:[#allocation5 + $0xe0] ss:$16 sps:$4 sm:$0xff]   ;;  %v2714_v43 = vld [vmem:[#allocation5 + $0x2c] ss:$16 sps:$4 sm:$0xff]  }
  0x72   : > { %v2685_v19 = vld [vmem:[#allocation5 + $0x104] ss:$16 sps:$4 sm:$0xff]   ;;  %v2687_v20 = vld [vmem:[#allocation5 + $0x100] ss:$16 sps:$4 sm:$0xff]   ;;  %v2712_v46 = vld [vmem:[#allocation5 + $0x28] ss:$16 sps:$4 sm:$0xff]  }
  0x73   : > { %v2688_v21 = vld [vmem:[#allocation5 + $0x124] ss:$16 sps:$4 sm:$0xff]   ;;  %v2690_v22 = vld [vmem:[#allocation5 + $0x120] ss:$16 sps:$4 sm:$0xff]   ;;  %v284_v47 = vld [vmem:[%s3235_s14 + $0x48] sm:$0xff]  ;;  %s2939_s30 = scalar_lea.vmem %s3738_s17, 8192 }
  0x74   : > { %782 = vmatpush1.bf16.msra.mxu1 %v2669_v5  ;;  %v2691_v23 = vld [vmem:[#allocation5 + $0x144] ss:$16 sps:$4 sm:$0xff]   ;;  %v2693_v24 = vld [vmem:[#allocation5 + $0x140] ss:$16 sps:$4 sm:$0xff]   ;;  %v286_v48 = vld [vmem:[%s3235_s14 + $0x58] sm:$0xff]  ;;  %p2940_p11 = scmp.ne.s32.totalorder %s3738_s17, %s2939_s30  ;;  %p3805_p0 = scmp.ne.s32.totalorder %s3800_s8, 0 }
  0x75   : > { %783 = vmatprep.subr.bf16.mxu1 %v2670_v6  ;;  %v2694_v25 = vld [vmem:[#allocation5 + $0x164] ss:$16 sps:$4 sm:$0xff]   ;;  %v2696_v26 = vld [vmem:[#allocation5 + $0x160] ss:$16 sps:$4 sm:$0xff]   ;;  %v2717_v49 = vld [vmem:[#allocation5 + $0x4c] ss:$16 sps:$4 sm:$0xff]   ;;  %v3266_v53 = vpack.c.bf16 %v286_v48, %v284_v47 }
  0x76   : > { %v2697_v27 = vld [vmem:[#allocation5 + $0x184] ss:$16 sps:$4 sm:$0xff]   ;;  %v2699_v28 = vld [vmem:[#allocation5 + $0x180] ss:$16 sps:$4 sm:$0xff]   ;;  %v2715_v50 = vld [vmem:[#allocation5 + $0x48] ss:$16 sps:$4 sm:$0xff]   ;;  %p2941_p2 = pnand %p2940_p11, %p3805_p0 }
  0x77   : > { %v2700_v29 = vld [vmem:[#allocation5 + $0x1a4] ss:$16 sps:$4 sm:$0xff]   ;;  %v2702_v30 = vld [vmem:[#allocation5 + $0x1a0] ss:$16 sps:$4 sm:$0xff]   ;;  %v2720_v52 = vld [vmem:[#allocation5 + $0x6c] ss:$16 sps:$4 sm:$0xff]  }
  0x78   : > { %784 = vmatpush1.bf16.msra.mxu1 %v2672_v7  ;;  %v2703_v31 = vld [vmem:[#allocation5 + $0x1c4] ss:$16 sps:$4 sm:$0xff]   ;;  %v2705_v32 = vld [vmem:[#allocation5 + $0x1c0] ss:$16 sps:$4 sm:$0xff]   ;;  %v2718_v56 = vld [vmem:[#allocation5 + $0x68] ss:$16 sps:$4 sm:$0xff]   ;;  %p2942_p3 = pneg %p2941_p2 }
  0x79   : > { %785 = vmatprep.subr.bf16.mxu1 %v2673_v8  ;;  %v2706_v33 = vld [vmem:[#allocation5 + $0x1e4] ss:$16 sps:$4 sm:$0xff]   ;;  %v2708_v34 = vld [vmem:[#allocation5 + $0x1e0] ss:$16 sps:$4 sm:$0xff]   ;;  %v288_v57 = vld [vmem:[%s3235_s14 + $0x68] sm:$0xff]  ;;  %s3018_s9 = smov [#allocation8]  }
  0x7a   : > { %v275_v35 = vld [vmem:[%s3235_s14] sm:$0xff]  ;;  %v277_v36 = vld [vmem:[%s3235_s14 + $0x10] sm:$0xff]  ;;  %v290_v58 = vld [vmem:[%s3235_s14 + $0x78] sm:$0xff]  ;;  %s2943_s6 = sshll.u32 %s3018_s9, 4  ;;  %s2944_s6 = int_to_ptr.vmem [resolvable:$false] %s2943_s6 }
  0x7b   : > { %v3254_v40 = vpack.c.bf16 %v277_v36, %v275_v35  ;;  %v279_v44 = vld [vmem:[%s3235_s14 + $0x20] sm:$0xff]  ;;  %v281_v45 = vld [vmem:[%s3235_s14 + $0x30] sm:$0xff]  ;;  %v2723_v59 = vld [vmem:[#allocation5 + $0x8c] ss:$16 sps:$4 sm:$0xff]   ;;  %v3276_v63 = vpack.c.bf16 %v290_v58, %v288_v57  ;;  %s2945_s10 = scalar_lea.vmem %s2944_s6, 16384  ;;  %p2946_p5 = scmp.lt.s32.totalorder %s3738_s17, %s2944_s6 }
  0x7c   : > { %786 = vmatpush1.bf16.msra.mxu1 %v2675_v9  ;;  %v3264_v51 = vpack.c.bf16 %v281_v45, %v279_v44  ;;  %v283_v54 = vld [vmem:[%s3235_s14 + $0x40] sm:$0xff]  ;;  %v285_v55 = vld [vmem:[%s3235_s14 + $0x50] sm:$0xff]  ;;  %v2721_v60 = vld [vmem:[#allocation5 + $0x88] ss:$16 sps:$4 sm:$0xff]   ;;  %p2947_p9 = scmp.lt.s32.totalorder %s2945_s10, %s2939_s30 }
  0x7d   : > { %787 = vmatprep.subr.bf16.mxu1 %v2676_v10  ;;  %v3274_v61 = vpack.c.bf16 %v285_v55, %v283_v54  ;;  %v2726_v62 = vld [vmem:[#allocation5 + $0xac] ss:$16 sps:$4 sm:$0xff]   ;;  %v287_v0 = vld [vmem:[%s3235_s14 + $0x60] sm:$0xff]  ;;  %v289_v1 = vld [vmem:[%s3235_s14 + $0x70] sm:$0xff] }
  0x7e   : > { %v2724_v2 = vld [vmem:[#allocation5 + $0xa8] ss:$16 sps:$4 sm:$0xff]   ;;  %v2729_v5 = vld [vmem:[#allocation5 + $0xcc] ss:$16 sps:$4 sm:$0xff]   ;;  %v3284_v6 = vpack.c.bf16 %v289_v1, %v287_v0  ;;  %v291_v10 = vld [vmem:[%s3235_s14 + $0x80] sm:$0xff]  ;;  %p2948_p12 = por %p2947_p9, %p2946_p5 }
  0x7f   : > { %v292_v3 = vld [vmem:[%s3235_s14 + $0x88] sm:$0xff]  ;;  %v294_v4 = vld [vmem:[%s3235_s14 + $0x98] sm:$0xff]  ;;  %v303_v58 = vld [vmem:[%s3235_s14 + $0xe0] sm:$0xff] }
  0x80   : > { %788 = vmatpush1.bf16.msra.mxu1 %v2678_v11  ;;  %v3286_v7 = vpack.c.bf16 %v294_v4, %v292_v3  ;;  %v2727_v8 = vld [vmem:[#allocation5 + $0xc8] ss:$16 sps:$4 sm:$0xff]   ;;  %v2732_v9 = vld [vmem:[#allocation5 + $0xec] ss:$16 sps:$4 sm:$0xff]   ;;  %p2949_p1 = pnand %p2948_p12, %p2942_p3 }
  0x81   : > { %789 = vmatprep.subr.bf16.mxu1 %v2679_v12  ;;  %v2757_v11 = vld [vmem:[#allocation7 + $0x4] ss:$8 sps:$4 sm:$0xff]   ;;  %v293_v12 = vld [vmem:[%s3235_s14 + $0x90] sm:$0xff]  ;;  %v2730_v13 = vld [vmem:[#allocation5 + $0xe8] ss:$16 sps:$4 sm:$0xff]  }
  0x82   : > { %v2759_v14 = vld [vmem:[#allocation7] ss:$8 sps:$4 sm:$0xff]   ;;  %1751 = vmatprep.subr.bf16.mxu0 %v2757_v11  ;;  %v2744_v36 = vld [vmem:[#allocation5 + $0x16c] ss:$16 sps:$4 sm:$0xff]   ;;  %v2768_v38 = vld [vmem:[#allocation7 + $0x30] ss:$8 sps:$4 sm:$0xff]  }
  0x83   : > { %1752 = vmatpush1.bf16.msra.mxu0 %v2759_v14  ;;  %v2739_v35 = vld [vmem:[#allocation5 + $0x148] ss:$16 sps:$4 sm:$0xff]   ;;  %v2769_v39 = vld [vmem:[#allocation7 + $0x44] ss:$8 sps:$4 sm:$0xff]   ;;  %v2772_v55 = vld [vmem:[#allocation7 + $0x54] ss:$8 sps:$4 sm:$0xff]  }
  0x84   : > { %790 = vmatpush1.bf16.msra.mxu1 %v2681_v16  ;;  %v296_v16 = vld [vmem:[%s3235_s14 + $0xa8] sm:$0xff]  ;;  %v310_v0 = vld [vmem:[%s3235_s14 + $0x118] sm:$0xff] }
  0x85   : > { %791 = vmatprep.subr.bf16.mxu1 %v2682_v17  ;;  %v298_v17 = vld [vmem:[%s3235_s14 + $0xb8] sm:$0xff]  ;;  %v304_v45 = vld [vmem:[%s3235_s14 + $0xe8] sm:$0xff] }
  0x86   : > { %v2742_v44 = vld [vmem:[#allocation5 + $0x168] ss:$16 sps:$4 sm:$0xff]   ;;  %v2747_v47 = vld [vmem:[#allocation5 + $0x18c] ss:$16 sps:$4 sm:$0xff]  }
  0x87   : > { %v2771_v48 = vld [vmem:[#allocation7 + $0x40] ss:$8 sps:$4 sm:$0xff]   ;;  %v2750_v54 = vld [vmem:[#allocation5 + $0x1ac] ss:$16 sps:$4 sm:$0xff]  }
  0x88   : > { %792 = vmatpush1.bf16.msra.mxu1 %v2684_v18  ;;  %v2735_v18 = vld [vmem:[#allocation5 + $0x10c] ss:$16 sps:$4 sm:$0xff]   ;;  %v2754_v14 = vld [vmem:[#allocation5 + $0x1e8] ss:$16 sps:$4 sm:$0xff]  }
  0x89   : > { %793 = vmatprep.subr.bf16.mxu1 %v2685_v19  ;;  %v3294_v19 = vpack.c.bf16 %v293_v12, %v291_v10  ;;  %v2775_v57 = vld [vmem:[#allocation7 + $0x64] ss:$8 sps:$4 sm:$0xff]   ;;  %v2780_v10 = vld [vmem:[#allocation7 + $0x70] ss:$8 sps:$4 sm:$0xff]  }
  0x8a   : > { %v2753_v1 = vld [vmem:[#allocation5 + $0x1cc] ss:$16 sps:$4 sm:$0xff]   ;;  %v307_v12 = vld [vmem:[%s3235_s14 + $0x100] sm:$0xff] }
  0x8b   : > { %v2781_v11 = vld [vmem:[#allocation7 + $0x84] ss:$8 sps:$4 sm:$0xff]  }
  0x8c   : > { %794 = vmatpush1.bf16.msra.mxu1 %v2687_v20  ;;  %v3296_v20 = vpack.c.bf16 %v298_v17, %v296_v16  ;;  %v312_v16 = vld [vmem:[%s3235_s14 + $0x128] sm:$0xff]  ;;  %v314_v17 = vld [vmem:[%s3235_s14 + $0x138] sm:$0xff] }
  0x8d   : > { %795 = vmatprep.subr.bf16.mxu1 %v2688_v21  ;;  %v2733_v21 = vld [vmem:[#allocation5 + $0x108] ss:$16 sps:$4 sm:$0xff]  }
  0x90   : > { %796 = vmatpush1.bf16.msra.mxu1 %v2690_v22  ;;  %v2738_v22 = vld [vmem:[#allocation5 + $0x12c] ss:$16 sps:$4 sm:$0xff]  }
  0x91   : > { %797 = vmatprep.subr.bf16.mxu1 %v2691_v23  ;;  %v2760_v23 = vld [vmem:[#allocation7 + $0x14] ss:$8 sps:$4 sm:$0xff]  }
  0x92   : > { %1753 = vmatprep.subr.bf16.mxu0 %v2760_v23  ;;  %v2784_v23 = vld [vmem:[#allocation7 + $0x94] ss:$8 sps:$4 sm:$0xff]  }
  0x94   : > { %798 = vmatpush1.bf16.msra.mxu1 %v2693_v24  ;;  %v2762_v24 = vld [vmem:[#allocation7 + $0x10] ss:$8 sps:$4 sm:$0xff]  }
  0x95   : > { %799 = vmatprep.subr.bf16.mxu1 %v2694_v25  ;;  %v2763_v25 = vld [vmem:[#allocation7 + $0x24] ss:$8 sps:$4 sm:$0xff]   ;;  %1754 = vmatpush1.bf16.msra.mxu0 %v2762_v24  ;;  %v2786_v24 = vld [vmem:[#allocation7 + $0x90] ss:$8 sps:$4 sm:$0xff]  }
  0x96   : > { %1755 = vmatprep.subr.bf16.mxu0 %v2763_v25  ;;  %v2787_v25 = vld [vmem:[#allocation7 + $0xa4] ss:$8 sps:$4 sm:$0xff]  }
  0x98   : > { %800 = vmatpush1.bf16.msra.mxu1 %v2696_v26  ;;  %v295_v26 = vld [vmem:[%s3235_s14 + $0xa0] sm:$0xff] }
  0x99   : > { %801 = vmatprep.subr.bf16.mxu1 %v2697_v27  ;;  %v297_v27 = vld [vmem:[%s3235_s14 + $0xb0] sm:$0xff] }
  0x9c   : > { %802 = vmatpush1.bf16.msra.mxu1 %v2699_v28  ;;  %v2736_v28 = vld [vmem:[#allocation5 + $0x128] ss:$16 sps:$4 sm:$0xff]  }
  0x9d   : > { %803 = vmatprep.subr.bf16.mxu1 %v2700_v29  ;;  %v300_v29 = vld [vmem:[%s3235_s14 + $0xc8] sm:$0xff] }
  0xa0   : > { %804 = vmatpush1.bf16.msra.mxu1 %v2702_v30  ;;  %v302_v30 = vld [vmem:[%s3235_s14 + $0xd8] sm:$0xff] }
  0xa1   : > { %805 = vmatprep.subr.bf16.mxu1 %v2703_v31  ;;  %v2741_v31 = vld [vmem:[#allocation5 + $0x14c] ss:$16 sps:$4 sm:$0xff]  }
  0xa4   : > { %806 = vmatpush1.bf16.msra.mxu1 %v2705_v32  ;;  %v2765_v32 = vld [vmem:[#allocation7 + $0x20] ss:$8 sps:$4 sm:$0xff]  }
  0xa5   : > { %807 = vmatprep.subr.bf16.mxu1 %v2706_v33  ;;  %v3304_v33 = vpack.c.bf16 %v297_v27, %v295_v26  ;;  %1756 = vmatpush1.bf16.msra.mxu0 %v2765_v32  ;;  %v311_v26 = vld [vmem:[%s3235_s14 + $0x120] sm:$0xff]  ;;  %v313_v27 = vld [vmem:[%s3235_s14 + $0x130] sm:$0xff] }
  0xa8   : > { %808 = vmatpush1.bf16.msra.mxu1 %v2708_v34  ;;  %v3306_v34 = vpack.c.bf16 %v302_v30, %v300_v29  ;;  %v318_v29 = vld [vmem:[%s3235_s14 + $0x158] sm:$0xff]  ;;  %v2789_v30 = vld [vmem:[#allocation7 + $0xa0] ss:$8 sps:$4 sm:$0xff]  }
  0xa9   : > { %970 = vmatprep.subr.bf16.mxu1 %v2711_v37  ;;  %v2766_v37 = vld [vmem:[#allocation7 + $0x34] ss:$8 sps:$4 sm:$0xff]  }
  0xaa   : > { %1757 = vmatprep.subr.bf16.mxu0 %v2766_v37  ;;  %v2793_v37 = vld [vmem:[#allocation7 + $0xc4] ss:$8 sps:$4 sm:$0xff]  }
  0xab   : > { %810 = vmatmul.mubr.bf16.vlgmr.msra.gmra.mrb[0].mxu1 %v3254_v40  ;;  %1758 = vmatpush1.bf16.msra.mxu0 %v2768_v38  ;;  %v315_v38 = vld [vmem:[%s3235_s14 + $0x140] sm:$0xff] }
  0xac   : > { %971 = vmatpush1.bf16.msra.mxu1 %v2709_v41  ;;  %819 = vmatprep.mubr.bf16.mxu1 %v3256_v42  ;;  %v299_v41 = vld [vmem:[%s3235_s14 + $0xc0] sm:$0xff] }
  0xad   : > { %972 = vmatprep.subr.bf16.mxu1 %v2714_v43  ;;  %v301_v43 = vld [vmem:[%s3235_s14 + $0xd0] sm:$0xff]  ;;  %1759 = vmatprep.subr.bf16.mxu0 %v2769_v39 }
  0xae   : > { %v317_v39 = vld [vmem:[%s3235_s14 + $0x150] sm:$0xff] }
  0xaf   : > { %1760 = vmatpush1.bf16.msra.mxu0 %v2771_v48  ;;  %v319_v48 = vld [vmem:[%s3235_s14 + $0x160] sm:$0xff] }
  0xb0   : > { %973 = vmatpush1.bf16.msra.mxu1 %v2712_v46  ;;  %v306_v46 = vld [vmem:[%s3235_s14 + $0xf8] sm:$0xff]  ;;  %1761 = vmatprep.subr.bf16.mxu0 %v2772_v55  ;;  %v324_v55 = vld [vmem:[%s3235_s14 + $0x188] sm:$0xff] }
  0xb1   : > { %974 = vmatprep.subr.bf16.mxu1 %v2717_v49  ;;  %v3314_v49 = vpack.c.bf16 %v301_v43, %v299_v41  ;;  %v320_v41 = vld [vmem:[%s3235_s14 + $0x168] sm:$0xff]  ;;  %v322_v43 = vld [vmem:[%s3235_s14 + $0x178] sm:$0xff] }
  0xb3   : > { %820 = vmatmul.mubr.bf16.gmra.mrb[4].mxu1 %v3264_v51 }
  0xb4   : > { %829 = vmatprep.mubr.bf16.mxu1 %v3266_v53  ;;  %975 = vmatpush1.bf16.msra.mxu1 %v2715_v50  ;;  %v3316_v50 = vpack.c.bf16 %v306_v46, %v304_v45  ;;  %v3354_v45 = vpack.c.bf16 %v317_v39, %v315_v38  ;;  %v3356_v46 = vpack.c.bf16 %v322_v43, %v320_v41  ;;  %v2810_v41 = vld [vmem:[#allocation7 + $0x114] ss:$8 sps:$4 sm:$0xff]  }
  0xb5   : > { %976 = vmatprep.subr.bf16.mxu1 %v2720_v52  ;;  %v2745_v52 = vld [vmem:[#allocation5 + $0x188] ss:$16 sps:$4 sm:$0xff]  }
  0xb8   : > { %977 = vmatpush1.bf16.msra.mxu1 %v2718_v56  ;;  %v2774_v56 = vld [vmem:[#allocation7 + $0x50] ss:$8 sps:$4 sm:$0xff]  }
  0xb9   : > { %978 = vmatprep.subr.bf16.mxu1 %v2723_v59  ;;  %v305_v59 = vld [vmem:[%s3235_s14 + $0xf0] sm:$0xff]  ;;  %1762 = vmatpush1.bf16.msra.mxu0 %v2774_v56  ;;  %v326_v56 = vld [vmem:[%s3235_s14 + $0x198] sm:$0xff] }
  0xba   : > { %v3324_v3 = vpack.c.bf16 %v305_v59, %v303_v58  ;;  %1763 = vmatprep.subr.bf16.mxu0 %v2775_v57  ;;  %v2799_v58 = vld [vmem:[#allocation7 + $0xe4] ss:$8 sps:$4 sm:$0xff]   ;;  %v3366_v59 = vpack.c.bf16 %v326_v56, %v324_v55 }
  0xbb   : > { %830 = vmatmul.mubr.bf16.gmra.mrb[8].mxu1 %v3274_v61  ;;  %v2813_v55 = vld [vmem:[#allocation7 + $0x124] ss:$8 sps:$4 sm:$0xff]  }
  0xbc   : > { %839 = vmatprep.mubr.bf16.mxu1 %v3276_v63  ;;  %979 = vmatpush1.bf16.msra.mxu1 %v2721_v60  ;;  %v2748_v60 = vld [vmem:[#allocation5 + $0x1a8] ss:$16 sps:$4 sm:$0xff]  }
  0xbd   : > { %980 = vmatprep.subr.bf16.mxu1 %v2726_v62  ;;  %v308_v62 = vld [vmem:[%s3235_s14 + $0x108] sm:$0xff] }
  0xbe   : > { %v3326_v4 = vpack.c.bf16 %v310_v0, %v308_v62  ;;  %v2802_v62 = vld [vmem:[#allocation7 + $0xf4] ss:$8 sps:$4 sm:$0xff]   ;;  %v323_v0 = vld [vmem:[%s3235_s14 + $0x180] sm:$0xff] }
  0xc0   : > { %981 = vmatpush1.bf16.msra.mxu1 %v2724_v2  ;;  %v2777_v2 = vld [vmem:[#allocation7 + $0x60] ss:$8 sps:$4 sm:$0xff]  }
  0xc1   : > { %982 = vmatprep.subr.bf16.mxu1 %v2729_v5  ;;  %v2751_v5 = vld [vmem:[#allocation5 + $0x1c8] ss:$16 sps:$4 sm:$0xff]   ;;  %1764 = vmatpush1.bf16.msra.mxu0 %v2777_v2 }
  0xc2   : > { %v2804_v2 = vld [vmem:[#allocation7 + $0xf0] ss:$8 sps:$4 sm:$0xff]  }
  0xc3   : > { %840 = vmatmul.mubr.bf16.gmra.mrb[12].mxu1 %v3284_v6 }
  0xc4   : > { %849 = vmatprep.mubr.bf16.mxu1 %v3286_v7  ;;  %983 = vmatpush1.bf16.msra.mxu1 %v2727_v8  ;;  %v2756_v8 = vld [vmem:[#allocation5 + $0x1ec] ss:$16 sps:$4 sm:$0xff]  }
  0xc5   : > { %984 = vmatprep.subr.bf16.mxu1 %v2732_v9  ;;  %v2778_v9 = vld [vmem:[#allocation7 + $0x74] ss:$8 sps:$4 sm:$0xff]  }
  0xc6   : > { %1765 = vmatprep.subr.bf16.mxu0 %v2778_v9 }
  0xc7   : > { %1766 = vmatpush1.bf16.msra.mxu0 %v2780_v10 }
  0xc8   : > { %985 = vmatpush1.bf16.msra.mxu1 %v2730_v13  ;;  %v309_v13 = vld [vmem:[%s3235_s14 + $0x110] sm:$0xff]  ;;  %1767 = vmatprep.subr.bf16.mxu0 %v2781_v11  ;;  %v327_v11 = vld [vmem:[%s3235_s14 + $0x1a0] sm:$0xff] }
  0xc9   : > { %986 = vmatprep.subr.bf16.mxu1 %v2735_v18  ;;  %v2783_v18 = vld [vmem:[#allocation7 + $0x80] ss:$8 sps:$4 sm:$0xff]  }
  0xcb   : > { %850 = vmatmul.mubr.bf16.gmra.mrb[16].mxu1 %v3294_v19  ;;  %1768 = vmatpush1.bf16.msra.mxu0 %v2783_v18 }
  0xcc   : > { %859 = vmatprep.mubr.bf16.mxu1 %v3296_v20  ;;  %987 = vmatpush1.bf16.msra.mxu1 %v2733_v21  ;;  %v3334_v21 = vpack.c.bf16 %v309_v13, %v307_v12  ;;  %v329_v12 = vld [vmem:[%s3235_s14 + $0x1b0] sm:$0xff]  ;;  %v332_v13 = vld [vmem:[%s3235_s14 + $0x1c8] sm:$0xff] }
  0xcd   : > { %988 = vmatprep.subr.bf16.mxu1 %v2738_v22  ;;  %v3336_v22 = vpack.c.bf16 %v314_v17, %v312_v16  ;;  %1769 = vmatprep.subr.bf16.mxu0 %v2784_v23  ;;  %v2807_v16 = vld [vmem:[#allocation7 + $0x104] ss:$8 sps:$4 sm:$0xff]   ;;  %v3384_v17 = vpack.c.bf16 %v329_v12, %v327_v11  ;;  %v2814_v12 = vld [vmem:[#allocation7 + $0x130] ss:$8 sps:$4 sm:$0xff]  }
  0xce   : > { %v331_v23 = vld [vmem:[%s3235_s14 + $0x1c0] sm:$0xff] }
  0xcf   : > { %1770 = vmatpush1.bf16.msra.mxu0 %v2786_v24  ;;  %v333_v24 = vld [vmem:[%s3235_s14 + $0x1d0] sm:$0xff] }
  0xd0   : > { %989 = vmatpush1.bf16.msra.mxu1 %v2736_v28  ;;  %v316_v28 = vld [vmem:[%s3235_s14 + $0x148] sm:$0xff]  ;;  %1771 = vmatprep.subr.bf16.mxu0 %v2787_v25 }
  0xd1   : > { %990 = vmatprep.subr.bf16.mxu1 %v2741_v31  ;;  %v3344_v31 = vpack.c.bf16 %v313_v27, %v311_v26  ;;  %v3346_v32 = vpack.c.bf16 %v318_v29, %v316_v28  ;;  %v336_v25 = vld [vmem:[%s3235_s14 + $0x1e8] sm:$0xff]  ;;  %v338_v26 = vld [vmem:[%s3235_s14 + $0x1f8] sm:$0xff]  ;;  %v3394_v27 = vpack.c.bf16 %v333_v24, %v331_v23  ;;  %v335_v29 = vld [vmem:[%s3235_s14 + $0x1e0] sm:$0xff] }
  0xd2   : > { %v3396_v28 = vpack.c.bf16 %v338_v26, %v336_v25 }
  0xd3   : > { %860 = vmatmul.mubr.bf16.gmra.mrb[20].mxu1 %v3304_v33  ;;  %1772 = vmatpush1.bf16.msra.mxu0 %v2789_v30  ;;  %v337_v30 = vld [vmem:[%s3235_s14 + $0x1f0] sm:$0xff] }
  0xd4   : > { %869 = vmatprep.mubr.bf16.mxu1 %v3306_v34  ;;  %991 = vmatpush1.bf16.msra.mxu1 %v2739_v35  ;;  %v2790_v35 = vld [vmem:[#allocation7 + $0xb4] ss:$8 sps:$4 sm:$0xff]  }
  0xd5   : > { %992 = vmatprep.subr.bf16.mxu1 %v2744_v36  ;;  %v2792_v36 = vld [vmem:[#allocation7 + $0xb0] ss:$8 sps:$4 sm:$0xff]   ;;  %1773 = vmatprep.subr.bf16.mxu0 %v2790_v35  ;;  %v3402_v35 = vpack.c.bf16 %v337_v30, %v335_v29  ;;  %v2817_v30 = vld [vmem:[#allocation7 + $0x140] ss:$8 sps:$4 sm:$0xff]  }
  0xd7   : > { %1774 = vmatpush1.bf16.msra.mxu0 %v2792_v36 }
  0xd8   : > { %993 = vmatpush1.bf16.msra.mxu1 %v2742_v44  ;;  %v2795_v44 = vld [vmem:[#allocation7 + $0xc0] ss:$8 sps:$4 sm:$0xff]   ;;  %1775 = vmatprep.subr.bf16.mxu0 %v2793_v37 }
  0xd9   : > { %994 = vmatprep.subr.bf16.mxu1 %v2747_v47  ;;  %v2796_v47 = vld [vmem:[#allocation7 + $0xd4] ss:$8 sps:$4 sm:$0xff]   ;;  %v2805_v37 = vld [vmem:[#allocation7 + $0x100] ss:$8 sps:$4 sm:$0xff]  }
  0xdb   : > { %870 = vmatmul.mubr.bf16.gmra.mrb[24].mxu1 %v3314_v49  ;;  %1776 = vmatpush1.bf16.msra.mxu0 %v2795_v44 }
  0xdc   : > { %879 = vmatprep.mubr.bf16.mxu1 %v3316_v50  ;;  %995 = vmatpush1.bf16.msra.mxu1 %v2745_v52  ;;  %v321_v52 = vld [vmem:[%s3235_s14 + $0x170] sm:$0xff] }
  0xdd   : > { %996 = vmatprep.subr.bf16.mxu1 %v2750_v54  ;;  %v2798_v54 = vld [vmem:[#allocation7 + $0xd0] ss:$8 sps:$4 sm:$0xff]   ;;  %1777 = vmatprep.subr.bf16.mxu0 %v2796_v47  ;;  %v3364_v57 = vpack.c.bf16 %v321_v52, %v319_v48 }
  0xde   : > { %v2808_v48 = vld [vmem:[#allocation7 + $0x110] ss:$8 sps:$4 sm:$0xff]  }
  0xdf   : > { %1778 = vmatpush1.bf16.msra.mxu0 %v2798_v54 }
  0xe0   : > { %997 = vmatpush1.bf16.msra.mxu1 %v2748_v60  ;;  %v2801_v60 = vld [vmem:[#allocation7 + $0xe0] ss:$8 sps:$4 sm:$0xff]   ;;  %1779 = vmatprep.subr.bf16.mxu0 %v2799_v58 }
  0xe1   : > { %998 = vmatprep.subr.bf16.mxu1 %v2753_v1  ;;  %v325_v1 = vld [vmem:[%s3235_s14 + $0x190] sm:$0xff] }
  0xe2   : > { %v3374_v9 = vpack.c.bf16 %v325_v1, %v323_v0 }
  0xe3   : > { %880 = vmatmul.mubr.bf16.gmra.mrb[28].mxu1 %v3324_v3  ;;  %1780 = vmatpush1.bf16.msra.mxu0 %v2801_v60 }
  0xe4   : > { %889 = vmatprep.mubr.bf16.mxu1 %v3326_v4  ;;  %999 = vmatpush1.bf16.msra.mxu1 %v2751_v5  ;;  %v328_v5 = vld [vmem:[%s3235_s14 + $0x1a8] sm:$0xff] }
  0xe5   : > { %1000 = vmatprep.subr.bf16.mxu1 %v2756_v8  ;;  %v330_v8 = vld [vmem:[%s3235_s14 + $0x1b8] sm:$0xff]  ;;  %1781 = vmatprep.subr.bf16.mxu0 %v2802_v62  ;;  %v2811_v62 = vld [vmem:[#allocation7 + $0x120] ss:$8 sps:$4 sm:$0xff]  }
  0xe6   : > { %v3376_v10 = vpack.c.bf16 %v330_v8, %v328_v5 }
  0xe7   : > { %1782 = vmatpush1.bf16.msra.mxu0 %v2804_v2  ;;  %v2816_v2 = vld [vmem:[#allocation7 + $0x134] ss:$8 sps:$4 sm:$0xff]  }
  0xe8   : > { %1001 = vmatpush1.bf16.msra.mxu1 %v2754_v14  ;;  %v334_v14 = vld [vmem:[%s3235_s14 + $0x1d8] sm:$0xff]  ;;  %1944 = vmatprep.subr.bf16.mxu0 %v2807_v16  ;;  %v2819_v16 = vld [vmem:[#allocation7 + $0x144] ss:$8 sps:$4 sm:$0xff]  }
  0xe9   : > { %v3386_v18 = vpack.c.bf16 %v334_v14, %v332_v13 }
  0xeb   : > { %890 = vmatmul.mubr.bf16.gmra.mrb[32].mxu1 %v3334_v21 }
  0xec   : > { %899 = vmatprep.mubr.bf16.mxu1 %v3336_v22 }
  0xf3   : > { %900 = vmatmul.mubr.bf16.gmra.mrb[36].mxu1 %v3344_v31 }
  0xf4   : > { %909 = vmatprep.mubr.bf16.mxu1 %v3346_v32 }
  0xfb   : > { %910 = vmatmul.mubr.bf16.gmra.mrb[40].mxu1 %v3354_v45 }
  0xfc   : > { %919 = vmatprep.mubr.bf16.mxu1 %v3356_v46 }
 0x103   : > { %920 = vmatmul.mubr.bf16.gmra.mrb[44].mxu1 %v3364_v57 }
 0x104   : > { %929 = vmatprep.mubr.bf16.mxu1 %v3366_v59 }
 0x10b   : > { %930 = vmatmul.mubr.bf16.gmra.mrb[48].mxu1 %v3374_v9 }
 0x10c   : > { %939 = vmatprep.mubr.bf16.mxu1 %v3376_v10 }
 0x113   : > { %940 = vmatmul.mubr.bf16.gmra.mrb[52].mxu1 %v3384_v17 }
 0x114   : > { %949 = vmatprep.mubr.bf16.mxu1 %v3386_v18 }
 0x11b   : > { %950 = vmatmul.mubr.bf16.gmra.mrb[56].mxu1 %v3394_v27 }
 0x11c   : > { %959 = vmatprep.mubr.bf16.mxu1 %v3396_v28 }
 0x123   : > { %960 = vmatmul.mubr.bf16.gmra.mrb[60].mxu1 %v3402_v35 }
 0x124   : > { %1002 = vmatprep.mubr.bf16.mxu1 %v3247_v15  ;;  %v437_v15 = vlaneseq }
 0x12b   : > { %1003 = vmatmul.mubr.bf16.vlgmr.msra.gmra.mrb[64].mxu1 %v3254_v40  ;;  %v3425_v40 = vshrl.u32 %v437_v15, 7 }
 0x12c   : > { %1012 = vmatprep.mubr.bf16.mxu1 %v3256_v42 }
 0x12d   : > { %v439_v42 = vsub.s32 0, %v3425_v40 }
 0x133   : > { %1013 = vmatmul.mubr.bf16.gmra.mrb[68].mxu1 %v3264_v51  ;;  %v3432_v51 = vld [vmem:[%s3788_s2] sm:$0xf] }
 0x134   : > { %1022 = vmatprep.mubr.bf16.mxu1 %v3266_v53  ;;  %v443_v53 = vsub.s32 1, %v3425_v40 }
 0x13b   : > { %1023 = vmatmul.mubr.bf16.gmra.mrb[72].mxu1 %v3274_v61  ;;  %v3439_v61 = vrot.slane %v3432_v51, %v439_v42 }
 0x13c   : > { %1032 = vmatprep.mubr.bf16.mxu1 %v3276_v63  ;;  %v3444_v63 = vrot.slane %v3432_v51, %v443_v53 }
 0x143   : > { %1033 = vmatmul.mubr.bf16.gmra.mrb[76].mxu1 %v3284_v6 }
 0x144   : > { %1042 = vmatprep.mubr.bf16.mxu1 %v3286_v7 }
 0x14b   : > { %1043 = vmatmul.mubr.bf16.gmra.mrb[80].mxu1 %v3294_v19 }
 0x14c   : > { %1052 = vmatprep.mubr.bf16.mxu1 %v3296_v20 }
 0x153   : > { %1053 = vmatmul.mubr.bf16.gmra.mrb[84].mxu1 %v3304_v33 }
 0x154   : > { %1062 = vmatprep.mubr.bf16.mxu1 %v3306_v34 }
 0x15b   : > { %1063 = vmatmul.mubr.bf16.gmra.mrb[88].mxu1 %v3314_v49 }
 0x15c   : > { %1072 = vmatprep.mubr.bf16.mxu1 %v3316_v50 }
 0x163   : > { %1073 = vmatmul.mubr.bf16.gmra.mrb[92].mxu1 %v3324_v3 }
 0x164   : > { %1082 = vmatprep.mubr.bf16.mxu1 %v3326_v4 }
 0x16b   : > { %1083 = vmatmul.mubr.bf16.gmra.mrb[96].mxu1 %v3334_v21 }
 0x16c   : > { %1092 = vmatprep.mubr.bf16.mxu1 %v3336_v22 }
 0x173   : > { %1093 = vmatmul.mubr.bf16.gmra.mrb[100].mxu1 %v3344_v31 }
 0x174   : > { %1102 = vmatprep.mubr.bf16.mxu1 %v3346_v32 }
 0x17b   : > { %1103 = vmatmul.mubr.bf16.gmra.mrb[104].mxu1 %v3354_v45 }
 0x17c   : > { %1112 = vmatprep.mubr.bf16.mxu1 %v3356_v46 }
 0x17e   : > { %v811_v6 = vpop.f32.mrb[0].mxu1 }
 0x17f   : > { %v812_v7 = vadd.f32 %v811_v6, %v3439_v61  ;;  %v813_v19 = vpop.f32.mrb[1].mxu1 }
 0x180   : > { %v814_v20 = vadd.f32 %v813_v19, %v3444_v63  ;;  %v815_v33 = vpop.f32.mrb[2].mxu1 }
 0x181   : > { %v816_v34 = vadd.f32 %v815_v33, %v3439_v61  ;;  %v817_v49 = vpop.f32.mrb[3].mxu1  ;;  %v1163_v3 = vmax.f32 %v812_v7, 0.0  ;;  %v2822_v7 = vld [vmem:[#allocation7 + $0x154] ss:$8 sps:$4 sm:$0xff]  }
 0x182   : > { %v818_v50 = vadd.f32 %v817_v49, %v3444_v63  ;;  %v1164_v21 = vmax.f32 %v814_v20, 0.0 }
 0x183   : > { %v1167_v4 = vmax.f32 %v816_v34, 0.0  ;;  %1113 = vmatmul.mubr.bf16.gmra.mrb[108].mxu1 %v3364_v57  ;;  %v2820_v34 = vld [vmem:[#allocation7 + $0x150] ss:$8 sps:$4 sm:$0xff]  }
 0x184   : > { %v1168_v22 = vmax.f32 %v818_v50, 0.0  ;;  %1122 = vmatprep.mubr.bf16.mxu1 %v3366_v59 }
 0x185   : > { %v1291_v31 = vpack.c.bf16 %v1167_v4, %v1163_v3  ;;  %v2825_v3 = vld [vmem:[#allocation7 + $0x164] ss:$8 sps:$4 sm:$0xff]  }
 0x186   : > { %v821_v32 = vpop.f32.mrb[4].mxu1  ;;  %v1292_v36 = vpack.c.bf16 %v1168_v22, %v1164_v21 }
 0x187   : > { %v822_v38 = vadd.f32 %v821_v32, %v3439_v61  ;;  %v823_v39 = vpop.f32.mrb[5].mxu1 }
 0x188   : > { %v824_v43 = vadd.f32 %v823_v39, %v3444_v63  ;;  %v825_v44 = vpop.f32.mrb[6].mxu1  ;;  %1783 = vmatprep.mubr.bf16.mxu0 %v1292_v36  ;;  %v2823_v36 = vld [vmem:[#allocation7 + $0x160] ss:$8 sps:$4 sm:$0xff]   ;;  %v2828_v39 = vld [vmem:[#allocation7 + $0x174] ss:$8 sps:$4 sm:$0xff]  }
 0x189   : > { %v826_v45 = vadd.f32 %v825_v44, %v3439_v61  ;;  %v827_v46 = vpop.f32.mrb[7].mxu1  ;;  %1784 = vmatmul.mubr.bf16.vlgmr.msra.gmra.mrb[0].mxu0 %v1291_v31  ;;  %v1171_v52 = vmax.f32 %v822_v38, 0.0 }
 0x18a   : > { %v828_v47 = vadd.f32 %v827_v46, %v3444_v63  ;;  %1945 = vmatpush1.bf16.msra.mxu0 %v2805_v37  ;;  %v1172_v56 = vmax.f32 %v824_v43, 0.0 }
 0x18b   : > { %v1175_v54 = vmax.f32 %v826_v45, 0.0  ;;  %1123 = vmatmul.mubr.bf16.gmra.mrb[112].mxu1 %v3374_v9  ;;  %1946 = vmatprep.subr.bf16.mxu0 %v2810_v41  ;;  %v2826_v45 = vld [vmem:[#allocation7 + $0x170] ss:$8 sps:$4 sm:$0xff]  }
 0x18c   : > { %v1176_v57 = vmax.f32 %v828_v47, 0.0  ;;  %1132 = vmatprep.mubr.bf16.mxu1 %v3376_v10 }
 0x18d   : > { %v1295_v58 = vpack.c.bf16 %v1175_v54, %v1171_v52 }
 0x18e   : > { %v1296_v59 = vpack.c.bf16 %v1176_v57, %v1172_v56  ;;  %v831_v60 = vpop.f32.mrb[8].mxu1  ;;  %1947 = vmatpush1.bf16.msra.mxu0 %v2808_v48  ;;  %v2831_v48 = vld [vmem:[#allocation7 + $0x184] ss:$8 sps:$4 sm:$0xff]  }
 0x18f   : > { %v832_v0 = vadd.f32 %v831_v60, %v3439_v61  ;;  %v833_v1 = vpop.f32.mrb[9].mxu1  ;;  %1948 = vmatprep.subr.bf16.mxu0 %v2813_v55 }
 0x190   : > { %v834_v5 = vadd.f32 %v833_v1, %v3444_v63  ;;  %v835_v8 = vpop.f32.mrb[10].mxu1  ;;  %1793 = vmatprep.mubr.bf16.mxu0 %v1296_v59 }
 0x191   : > { %v836_v9 = vadd.f32 %v835_v8, %v3439_v61  ;;  %v837_v11 = vpop.f32.mrb[11].mxu1  ;;  %1794 = vmatmul.mubr.bf16.gmra.mrb[4].mxu0 %v1295_v58  ;;  %v1179_v13 = vmax.f32 %v832_v0, 0.0  ;;  %v2829_v58 = vld [vmem:[#allocation7 + $0x180] ss:$8 sps:$4 sm:$0xff]   ;;  %v2832_v8 = vld [vmem:[#allocation7 + $0x190] ss:$8 sps:$4 sm:$0xff]  }
 0x192   : > { %v838_v10 = vadd.f32 %v837_v11, %v3444_v63  ;;  %1949 = vmatpush1.bf16.msra.mxu0 %v2811_v62  ;;  %v1180_v23 = vmax.f32 %v834_v5, 0.0  ;;  %v2834_v62 = vld [vmem:[#allocation7 + $0x194] ss:$8 sps:$4 sm:$0xff]  }
 0x193   : > { %v1183_v14 = vmax.f32 %v836_v9, 0.0  ;;  %1133 = vmatmul.mubr.bf16.gmra.mrb[116].mxu1 %v3384_v17  ;;  %1950 = vmatprep.subr.bf16.mxu0 %v2816_v2 }
 0x194   : > { %v1184_v24 = vmax.f32 %v838_v10, 0.0  ;;  %1142 = vmatprep.mubr.bf16.mxu1 %v3386_v18  ;;  %v2837_v10 = vld [vmem:[#allocation7 + $0x1a4] ss:$8 sps:$4 sm:$0xff]  }
 0x195   : > { %v1299_v25 = vpack.c.bf16 %v1183_v14, %v1179_v13 }
 0x196   : > { %v1300_v26 = vpack.c.bf16 %v1184_v24, %v1180_v23  ;;  %v841_v29 = vpop.f32.mrb[12].mxu1  ;;  %1951 = vmatpush1.bf16.msra.mxu0 %v2814_v12  ;;  %v2835_v24 = vld [vmem:[#allocation7 + $0x1a0] ss:$8 sps:$4 sm:$0xff]  }
 0x197   : > { %v842_v15 = vadd.f32 %v841_v29, %v3439_v61  ;;  %v843_v6 = vpop.f32.mrb[13].mxu1  ;;  %1952 = vmatprep.subr.bf16.mxu0 %v2819_v16  ;;  %v2840_v29 = vld [vmem:[#allocation7 + $0x1b4] ss:$8 sps:$4 sm:$0xff]  }
 0x198   : > { %v844_v19 = vadd.f32 %v843_v6, %v3444_v63  ;;  %v845_v20 = vpop.f32.mrb[14].mxu1  ;;  %1803 = vmatprep.mubr.bf16.mxu0 %v1300_v26 }
 0x199   : > { %v846_v17 = vadd.f32 %v845_v20, %v3439_v61  ;;  %v847_v33 = vpop.f32.mrb[15].mxu1  ;;  %1804 = vmatmul.mubr.bf16.gmra.mrb[8].mxu0 %v1299_v25  ;;  %v1187_v49 = vmax.f32 %v842_v15, 0.0  ;;  %v2838_v20 = vld [vmem:[#allocation7 + $0x1b0] ss:$8 sps:$4 sm:$0xff]  }
 0x19a   : > { %v848_v18 = vadd.f32 %v847_v33, %v3444_v63  ;;  %1953 = vmatpush1.bf16.msra.mxu0 %v2817_v30  ;;  %v1188_v4 = vmax.f32 %v844_v19, 0.0 }
 0x19b   : > { %v1191_v50 = vmax.f32 %v846_v17, 0.0  ;;  %1143 = vmatmul.mubr.bf16.gmra.mrb[120].mxu1 %v3394_v27  ;;  %1954 = vmatprep.subr.bf16.mxu0 %v2822_v7 }
 0x19c   : > { %v1192_v21 = vmax.f32 %v848_v18, 0.0  ;;  %1152 = vmatprep.mubr.bf16.mxu1 %v3396_v28  ;;  %v2843_v18 = vld [vmem:[#allocation7 + $0x1c4] ss:$8 sps:$4 sm:$0xff]  }
 0x19d   : > { %v1303_v22 = vpack.c.bf16 %v1191_v50, %v1187_v49 }
 0x19e   : > { %v1304_v31 = vpack.c.bf16 %v1192_v21, %v1188_v4  ;;  %v851_v32 = vpop.f32.mrb[16].mxu1  ;;  %1955 = vmatpush1.bf16.msra.mxu0 %v2820_v34  ;;  %v2841_v21 = vld [vmem:[#allocation7 + $0x1c0] ss:$8 sps:$4 sm:$0xff]  }
 0x19f   : > { %v852_v37 = vadd.f32 %v851_v32, %v3439_v61  ;;  %v853_v38 = vpop.f32.mrb[17].mxu1  ;;  %1956 = vmatprep.subr.bf16.mxu0 %v2825_v3  ;;  %v2846_v32 = vld [vmem:[#allocation7 + $0x1d4] ss:$8 sps:$4 sm:$0xff]  }
 0x1a0   : > { %v854_v41 = vadd.f32 %v853_v38, %v3444_v63  ;;  %v855_v43 = vpop.f32.mrb[18].mxu1  ;;  %1813 = vmatprep.mubr.bf16.mxu0 %v1304_v31 }
 0x1a1   : > { %v856_v27 = vadd.f32 %v855_v43, %v3439_v61  ;;  %v857_v44 = vpop.f32.mrb[19].mxu1  ;;  %1814 = vmatmul.mubr.bf16.gmra.mrb[12].mxu0 %v1303_v22  ;;  %v1195_v46 = vmax.f32 %v852_v37, 0.0  ;;  %v2844_v43 = vld [vmem:[#allocation7 + $0x1d0] ss:$8 sps:$4 sm:$0xff]  }
 0x1a2   : > { %v858_v28 = vadd.f32 %v857_v44, %v3444_v63  ;;  %1957 = vmatpush1.bf16.msra.mxu0 %v2823_v36  ;;  %v1196_v52 = vmax.f32 %v854_v41, 0.0 }
 0x1a3   : > { %v1199_v47 = vmax.f32 %v856_v27, 0.0  ;;  %1153 = vmatmul.mubr.bf16.gmra.mrb[124].mxu1 %v3402_v35  ;;  %1958 = vmatprep.subr.bf16.mxu0 %v2828_v39 }
 0x1a4   : > { %v1200_v54 = vmax.f32 %v858_v28, 0.0  ;;  %v2849_v28 = vld [vmem:[#allocation7 + $0x1e4] ss:$8 sps:$4 sm:$0xff]  }
 0x1a5   : > { %v1307_v55 = vpack.c.bf16 %v1199_v47, %v1195_v46 }
 0x1a6   : > { %v1308_v56 = vpack.c.bf16 %v1200_v54, %v1196_v52  ;;  %v861_v57 = vpop.f32.mrb[20].mxu1  ;;  %1959 = vmatpush1.bf16.msra.mxu0 %v2826_v45  ;;  %v2847_v54 = vld [vmem:[#allocation7 + $0x1e0] ss:$8 sps:$4 sm:$0xff]  }
 0x1a7   : > { %v862_v59 = vadd.f32 %v861_v57, %v3439_v61  ;;  %v863_v60 = vpop.f32.mrb[21].mxu1  ;;  %1960 = vmatprep.subr.bf16.mxu0 %v2831_v48  ;;  %v2852_v57 = vld [vmem:[#allocation7 + $0x1f4] ss:$8 sps:$4 sm:$0xff]  }
 0x1a8   : > { %v864_v0 = vadd.f32 %v863_v60, %v3444_v63  ;;  %v865_v1 = vpop.f32.mrb[22].mxu1  ;;  %1823 = vmatprep.mubr.bf16.mxu0 %v1308_v56 }
 0x1a9   : > { %v866_v35 = vadd.f32 %v865_v1, %v3439_v61  ;;  %v867_v2 = vpop.f32.mrb[23].mxu1  ;;  %1824 = vmatmul.mubr.bf16.gmra.mrb[16].mxu0 %v1307_v55  ;;  %v1203_v9 = vmax.f32 %v862_v59, 0.0  ;;  %v2850_v1 = vld [vmem:[#allocation7 + $0x1f0] ss:$8 sps:$4 sm:$0xff]  }
 0x1aa   : > { %v868_v5 = vadd.f32 %v867_v2, %v3444_v63  ;;  %1961 = vmatpush1.bf16.msra.mxu0 %v2829_v58  ;;  %v1204_v12 = vmax.f32 %v864_v0, 0.0 }
 0x1ab   : > { %v1207_v11 = vmax.f32 %v866_v35, 0.0  ;;  %1962 = vmatprep.subr.bf16.mxu0 %v2834_v62 }
 0x1ac   : > { %v1208_v13 = vmax.f32 %v868_v5, 0.0 }
 0x1ad   : > { %v1311_v14 = vpack.c.bf16 %v1207_v11, %v1203_v9 }
 0x1ae   : > { %v1312_v16 = vpack.c.bf16 %v1208_v13, %v1204_v12  ;;  %v871_v23 = vpop.f32.mrb[24].mxu1  ;;  %1963 = vmatpush1.bf16.msra.mxu0 %v2832_v8 }
 0x1af   : > { %v872_v25 = vadd.f32 %v871_v23, %v3439_v61  ;;  %v873_v26 = vpop.f32.mrb[25].mxu1  ;;  %1964 = vmatprep.subr.bf16.mxu0 %v2837_v10 }
 0x1b0   : > { %v874_v30 = vadd.f32 %v873_v26, %v3444_v63  ;;  %v875_v15 = vpop.f32.mrb[26].mxu1  ;;  %1833 = vmatprep.mubr.bf16.mxu0 %v1312_v16 }
 0x1b1   : > { %v876_v6 = vadd.f32 %v875_v15, %v3439_v61  ;;  %v877_v7 = vpop.f32.mrb[27].mxu1  ;;  %1834 = vmatmul.mubr.bf16.gmra.mrb[20].mxu0 %v1311_v14  ;;  %v1211_v17 = vmax.f32 %v872_v25, 0.0 }
 0x1b2   : > { %v878_v19 = vadd.f32 %v877_v7, %v3444_v63  ;;  %1965 = vmatpush1.bf16.msra.mxu0 %v2835_v24  ;;  %v1212_v34 = vmax.f32 %v874_v30, 0.0 }
 0x1b3   : > { %v1215_v33 = vmax.f32 %v876_v6, 0.0  ;;  %1966 = vmatprep.subr.bf16.mxu0 %v2840_v29 }
 0x1b4   : > { %v1216_v49 = vmax.f32 %v878_v19, 0.0 }
 0x1b5   : > { %v1315_v50 = vpack.c.bf16 %v1215_v33, %v1211_v17 }
 0x1b6   : > { %v1316_v3 = vpack.c.bf16 %v1216_v49, %v1212_v34  ;;  %v881_v4 = vpop.f32.mrb[28].mxu1  ;;  %1967 = vmatpush1.bf16.msra.mxu0 %v2838_v20 }
 0x1b7   : > { %v882_v22 = vadd.f32 %v881_v4, %v3439_v61  ;;  %v883_v31 = vpop.f32.mrb[29].mxu1  ;;  %1968 = vmatprep.subr.bf16.mxu0 %v2843_v18 }
 0x1b8   : > { %v884_v36 = vadd.f32 %v883_v31, %v3444_v63  ;;  %v885_v37 = vpop.f32.mrb[30].mxu1  ;;  %1843 = vmatprep.mubr.bf16.mxu0 %v1316_v3 }
 0x1b9   : > { %v886_v38 = vadd.f32 %v885_v37, %v3439_v61  ;;  %v887_v39 = vpop.f32.mrb[31].mxu1  ;;  %1844 = vmatmul.mubr.bf16.gmra.mrb[24].mxu0 %v1315_v50  ;;  %v1219_v27 = vmax.f32 %v882_v22, 0.0 }
 0x1ba   : > { %v888_v41 = vadd.f32 %v887_v39, %v3444_v63  ;;  %1969 = vmatpush1.bf16.msra.mxu0 %v2841_v21  ;;  %v1220_v45 = vmax.f32 %v884_v36, 0.0 }
 0x1bb   : > { %v1223_v44 = vmax.f32 %v886_v38, 0.0  ;;  %1970 = vmatprep.subr.bf16.mxu0 %v2846_v32 }
 0x1bc   : > { %v1224_v46 = vmax.f32 %v888_v41, 0.0 }
 0x1bd   : > { %v1319_v47 = vpack.c.bf16 %v1223_v44, %v1219_v27 }
 0x1be   : > { %v1320_v48 = vpack.c.bf16 %v1224_v46, %v1220_v45  ;;  %v891_v52 = vpop.f32.mrb[32].mxu1  ;;  %1971 = vmatpush1.bf16.msra.mxu0 %v2844_v43 }
 0x1bf   : > { %v892_v55 = vadd.f32 %v891_v52, %v3439_v61  ;;  %v893_v56 = vpop.f32.mrb[33].mxu1  ;;  %1972 = vmatprep.subr.bf16.mxu0 %v2849_v28 }
 0x1c0   : > { %v894_v58 = vadd.f32 %v893_v56, %v3444_v63  ;;  %v895_v59 = vpop.f32.mrb[34].mxu1  ;;  %1853 = vmatprep.mubr.bf16.mxu0 %v1320_v48 }
 0x1c1   : > { %v896_v60 = vadd.f32 %v895_v59, %v3439_v61  ;;  %v897_v62 = vpop.f32.mrb[35].mxu1  ;;  %1854 = vmatmul.mubr.bf16.gmra.mrb[28].mxu0 %v1319_v47  ;;  %v1227_v35 = vmax.f32 %v892_v55, 0.0 }
 0x1c2   : > { %v898_v0 = vadd.f32 %v897_v62, %v3444_v63  ;;  %1973 = vmatpush1.bf16.msra.mxu0 %v2847_v54  ;;  %v1228_v5 = vmax.f32 %v894_v58, 0.0 }
 0x1c3   : > { %v1231_v2 = vmax.f32 %v896_v60, 0.0  ;;  %1974 = vmatprep.subr.bf16.mxu0 %v2852_v57 }
 0x1c4   : > { %v1232_v8 = vmax.f32 %v898_v0, 0.0 }
 0x1c5   : > { %v1323_v9 = vpack.c.bf16 %v1231_v2, %v1227_v35 }
 0x1c6   : > { %v1324_v11 = vpack.c.bf16 %v1232_v8, %v1228_v5  ;;  %v901_v10 = vpop.f32.mrb[36].mxu1  ;;  %1975 = vmatpush1.bf16.msra.mxu0 %v2850_v1 }
 0x1c7   : > { %v902_v12 = vadd.f32 %v901_v10, %v3439_v61  ;;  %v903_v13 = vpop.f32.mrb[37].mxu1 }
 0x1c8   : > { %v904_v14 = vadd.f32 %v903_v13, %v3444_v63  ;;  %v905_v16 = vpop.f32.mrb[38].mxu1  ;;  %1863 = vmatprep.mubr.bf16.mxu0 %v1324_v11 }
 0x1c9   : > { %v906_v23 = vadd.f32 %v905_v16, %v3439_v61  ;;  %v907_v24 = vpop.f32.mrb[39].mxu1  ;;  %1864 = vmatmul.mubr.bf16.gmra.mrb[32].mxu0 %v1323_v9  ;;  %v1235_v26 = vmax.f32 %v902_v12, 0.0 }
 0x1ca   : > { %v908_v25 = vadd.f32 %v907_v24, %v3444_v63  ;;  %v1236_v30 = vmax.f32 %v904_v14, 0.0 }
 0x1cb   : > { %v1239_v29 = vmax.f32 %v906_v23, 0.0 }
 0x1cc   : > { %v1240_v15 = vmax.f32 %v908_v25, 0.0 }
 0x1cd   : > { %v1327_v6 = vpack.c.bf16 %v1239_v29, %v1235_v26 }
 0x1ce   : > { %v1328_v7 = vpack.c.bf16 %v1240_v15, %v1236_v30  ;;  %v911_v19 = vpop.f32.mrb[40].mxu1 }
 0x1cf   : > { %v912_v20 = vadd.f32 %v911_v19, %v3439_v61  ;;  %v913_v17 = vpop.f32.mrb[41].mxu1 }
 0x1d0   : > { %v914_v33 = vadd.f32 %v913_v17, %v3444_v63  ;;  %v915_v18 = vpop.f32.mrb[42].mxu1  ;;  %1873 = vmatprep.mubr.bf16.mxu0 %v1328_v7 }
 0x1d1   : > { %v916_v34 = vadd.f32 %v915_v18, %v3439_v61  ;;  %v917_v49 = vpop.f32.mrb[43].mxu1  ;;  %1874 = vmatmul.mubr.bf16.gmra.mrb[36].mxu0 %v1327_v6  ;;  %v1243_v3 = vmax.f32 %v912_v20, 0.0 }
 0x1d2   : > { %v918_v50 = vadd.f32 %v917_v49, %v3444_v63  ;;  %v1244_v21 = vmax.f32 %v914_v33, 0.0 }
 0x1d3   : > { %v1247_v4 = vmax.f32 %v916_v34, 0.0 }
 0x1d4   : > { %v1248_v22 = vmax.f32 %v918_v50, 0.0 }
 0x1d5   : > { %v1331_v31 = vpack.c.bf16 %v1247_v4, %v1243_v3 }
 0x1d6   : > { %v1332_v32 = vpack.c.bf16 %v1248_v22, %v1244_v21  ;;  %v921_v36 = vpop.f32.mrb[44].mxu1 }
 0x1d7   : > { %v922_v37 = vadd.f32 %v921_v36, %v3439_v61  ;;  %v923_v38 = vpop.f32.mrb[45].mxu1 }
 0x1d8   : > { %v924_v39 = vadd.f32 %v923_v38, %v3444_v63  ;;  %v925_v41 = vpop.f32.mrb[46].mxu1  ;;  %1883 = vmatprep.mubr.bf16.mxu0 %v1332_v32 }
 0x1d9   : > { %v926_v43 = vadd.f32 %v925_v41, %v3439_v61  ;;  %v927_v27 = vpop.f32.mrb[47].mxu1  ;;  %1884 = vmatmul.mubr.bf16.gmra.mrb[40].mxu0 %v1331_v31  ;;  %v1251_v28 = vmax.f32 %v922_v37, 0.0  ;;  %v447_v37 = vsub.s32 2, %v3425_v40  ;;  %v451_v41 = vsub.s32 3, %v3425_v40 }
 0x1da   : > { %v928_v44 = vadd.f32 %v927_v27, %v3444_v63  ;;  %v1252_v46 = vmax.f32 %v924_v39, 0.0 }
 0x1db   : > { %v1255_v45 = vmax.f32 %v926_v43, 0.0 }
 0x1dc   : > { %v1256_v47 = vmax.f32 %v928_v44, 0.0 }
 0x1dd   : > { %v1335_v48 = vpack.c.bf16 %v1255_v45, %v1251_v28 }
 0x1de   : > { %v1336_v52 = vpack.c.bf16 %v1256_v47, %v1252_v46  ;;  %v931_v54 = vpop.f32.mrb[48].mxu1  ;;  %v3523_v46 = vrot.slane %v3432_v51, %v447_v37 }
 0x1df   : > { %v932_v55 = vadd.f32 %v931_v54, %v3439_v61  ;;  %v933_v56 = vpop.f32.mrb[49].mxu1 }
 0x1e0   : > { %v934_v57 = vadd.f32 %v933_v56, %v3444_v63  ;;  %v935_v58 = vpop.f32.mrb[50].mxu1  ;;  %1893 = vmatprep.mubr.bf16.mxu0 %v1336_v52  ;;  %v3526_v52 = vrot.slane %v3432_v51, %v451_v41 }
 0x1e1   : > { %v936_v59 = vadd.f32 %v935_v58, %v3439_v61  ;;  %v937_v60 = vpop.f32.mrb[51].mxu1  ;;  %1894 = vmatmul.mubr.bf16.gmra.mrb[44].mxu0 %v1335_v48  ;;  %v1259_v0 = vmax.f32 %v932_v55, 0.0 }
 0x1e2   : > { %v938_v62 = vadd.f32 %v937_v60, %v3444_v63  ;;  %v1260_v35 = vmax.f32 %v934_v57, 0.0 }
 0x1e3   : > { %v1263_v1 = vmax.f32 %v936_v59, 0.0 }
 0x1e4   : > { %v1264_v2 = vmax.f32 %v938_v62, 0.0 }
 0x1e5   : > { %v1339_v5 = vpack.c.bf16 %v1263_v1, %v1259_v0 }
 0x1e6   : > { %v1340_v8 = vpack.c.bf16 %v1264_v2, %v1260_v35  ;;  %v941_v9 = vpop.f32.mrb[52].mxu1 }
 0x1e7   : > { %v942_v11 = vadd.f32 %v941_v9, %v3439_v61  ;;  %v943_v10 = vpop.f32.mrb[53].mxu1 }
 0x1e8   : > { %v944_v12 = vadd.f32 %v943_v10, %v3444_v63  ;;  %v945_v13 = vpop.f32.mrb[54].mxu1  ;;  %1903 = vmatprep.mubr.bf16.mxu0 %v1340_v8 }
 0x1e9   : > { %v946_v14 = vadd.f32 %v945_v13, %v3439_v61  ;;  %v947_v16 = vpop.f32.mrb[55].mxu1  ;;  %1904 = vmatmul.mubr.bf16.gmra.mrb[48].mxu0 %v1339_v5  ;;  %v1267_v24 = vmax.f32 %v942_v11, 0.0 }
 0x1ea   : > { %v948_v23 = vadd.f32 %v947_v16, %v3444_v63  ;;  %v1268_v26 = vmax.f32 %v944_v12, 0.0 }
 0x1eb   : > { %v1271_v25 = vmax.f32 %v946_v14, 0.0 }
 0x1ec   : > { %v1272_v29 = vmax.f32 %v948_v23, 0.0 }
 0x1ed   : > { %v1343_v30 = vpack.c.bf16 %v1271_v25, %v1267_v24 }
 0x1ee   : > { %v1344_v15 = vpack.c.bf16 %v1272_v29, %v1268_v26  ;;  %v951_v6 = vpop.f32.mrb[56].mxu1 }
 0x1ef   : > { %v952_v7 = vadd.f32 %v951_v6, %v3439_v61  ;;  %v953_v19 = vpop.f32.mrb[57].mxu1 }
 0x1f0   : > { %v954_v20 = vadd.f32 %v953_v19, %v3444_v63  ;;  %v955_v17 = vpop.f32.mrb[58].mxu1  ;;  %1913 = vmatprep.mubr.bf16.mxu0 %v1344_v15 }
 0x1f1   : > { %v956_v33 = vadd.f32 %v955_v17, %v3439_v61  ;;  %v957_v18 = vpop.f32.mrb[59].mxu1  ;;  %1914 = vmatmul.mubr.bf16.gmra.mrb[52].mxu0 %v1343_v30  ;;  %v1275_v49 = vmax.f32 %v952_v7, 0.0 }
 0x1f2   : > { %v958_v34 = vadd.f32 %v957_v18, %v3444_v63  ;;  %v1276_v3 = vmax.f32 %v954_v20, 0.0 }
 0x1f3   : > { %v1279_v50 = vmax.f32 %v956_v33, 0.0 }
 0x1f4   : > { %v1280_v4 = vmax.f32 %v958_v34, 0.0 }
 0x1f5   : > { %v1347_v21 = vpack.c.bf16 %v1279_v50, %v1275_v49 }
 0x1f6   : > { %v1348_v22 = vpack.c.bf16 %v1280_v4, %v1276_v3  ;;  %v961_v31 = vpop.f32.mrb[60].mxu1 }
 0x1f7   : > { %v962_v32 = vadd.f32 %v961_v31, %v3439_v61  ;;  %v963_v36 = vpop.f32.mrb[61].mxu1 }
 0x1f8   : > { %v964_v38 = vadd.f32 %v963_v36, %v3444_v63  ;;  %v965_v39 = vpop.f32.mrb[62].mxu1  ;;  %1923 = vmatprep.mubr.bf16.mxu0 %v1348_v22 }
 0x1f9   : > { %v966_v43 = vadd.f32 %v965_v39, %v3439_v61  ;;  %v967_v27 = vpop.f32.mrb[63].mxu1  ;;  %1924 = vmatmul.mubr.bf16.gmra.mrb[56].mxu0 %v1347_v21  ;;  %v1283_v28 = vmax.f32 %v962_v32, 0.0 }
 0x1fa   : > { %v968_v44 = vadd.f32 %v967_v27, %v3444_v63  ;;  %v1284_v47 = vmax.f32 %v964_v38, 0.0 }
 0x1fb   : > { %v1287_v45 = vmax.f32 %v966_v43, 0.0 }
 0x1fc   : > { %v1288_v48 = vmax.f32 %v968_v44, 0.0 }
 0x1fd   : > { %v1351_v54 = vpack.c.bf16 %v1287_v45, %v1283_v28 }
 0x1fe   : > { %v1352_v55 = vpack.c.bf16 %v1288_v48, %v1284_v47  ;;  %v1004_v56 = vpop.f32.mrb[64].mxu1 }
 0x1ff   : > { %v1005_v57 = vadd.f32 %v1004_v56, %v3523_v46  ;;  %v1006_v61 = vpop.f32.mrb[65].mxu1 }
 0x200   : > { %v1007_v58 = vadd.f32 %v1006_v61, %v3526_v52  ;;  %v1008_v59 = vpop.f32.mrb[66].mxu1  ;;  %1933 = vmatprep.mubr.bf16.mxu0 %v1352_v55 }
 0x201   : > { %v1009_v63 = vadd.f32 %v1008_v59, %v3523_v46  ;;  %v1010_v60 = vpop.f32.mrb[67].mxu1  ;;  %1934 = vmatmul.mubr.bf16.gmra.mrb[60].mxu0 %v1351_v54  ;;  %v1165_v0 = vmax.f32 %v1005_v57, 0.0 }
 0x202   : > { %v1011_v62 = vadd.f32 %v1010_v60, %v3526_v52  ;;  %v1166_v51 = vmax.f32 %v1007_v58, 0.0 }
 0x203   : > { %v1169_v1 = vmax.f32 %v1009_v63, 0.0 }
 0x204   : > { %v1170_v35 = vmax.f32 %v1011_v62, 0.0 }
 0x205   : > { %v1293_v2 = vpack.c.bf16 %v1169_v1, %v1165_v0 }
 0x206   : > { %v1294_v5 = vpack.c.bf16 %v1170_v35, %v1166_v51  ;;  %v1014_v8 = vpop.f32.mrb[68].mxu1 }
 0x207   : > { %v1015_v9 = vadd.f32 %v1014_v8, %v3523_v46  ;;  %v1016_v11 = vpop.f32.mrb[69].mxu1 }
 0x208   : > { %v1017_v10 = vadd.f32 %v1016_v11, %v3526_v52  ;;  %v1018_v12 = vpop.f32.mrb[70].mxu1  ;;  %1976 = vmatprep.mubr.bf16.mxu0 %v1294_v5 }
 0x209   : > { %v1019_v13 = vadd.f32 %v1018_v12, %v3523_v46  ;;  %v1020_v14 = vpop.f32.mrb[71].mxu1  ;;  %1977 = vmatmul.mubr.bf16.vlgmr.msra.gmra.mrb[0].mxu0 %v1293_v2  ;;  %v1173_v23 = vmax.f32 %v1015_v9, 0.0 }
 0x20a   : > { %v1021_v16 = vadd.f32 %v1020_v14, %v3526_v52  ;;  %v1174_v25 = vmax.f32 %v1017_v10, 0.0 }
 0x20b   : > { %v1177_v24 = vmax.f32 %v1019_v13, 0.0 }
 0x20c   : > { %v1178_v26 = vmax.f32 %v1021_v16, 0.0 }
 0x20d   : > { %v1297_v29 = vpack.c.bf16 %v1177_v24, %v1173_v23 }
 0x20e   : > { %v1298_v30 = vpack.c.bf16 %v1178_v26, %v1174_v25  ;;  %v1024_v15 = vpop.f32.mrb[72].mxu1 }
 0x20f   : > { %v1025_v6 = vadd.f32 %v1024_v15, %v3523_v46  ;;  %v1026_v7 = vpop.f32.mrb[73].mxu1 }
 0x210   : > { %v1027_v19 = vadd.f32 %v1026_v7, %v3526_v52  ;;  %v1028_v20 = vpop.f32.mrb[74].mxu1  ;;  %1986 = vmatprep.mubr.bf16.mxu0 %v1298_v30 }
 0x211   : > { %v1029_v17 = vadd.f32 %v1028_v20, %v3523_v46  ;;  %v1030_v33 = vpop.f32.mrb[75].mxu1  ;;  %1987 = vmatmul.mubr.bf16.gmra.mrb[4].mxu0 %v1297_v29  ;;  %v1181_v34 = vmax.f32 %v1025_v6, 0.0 }
 0x212   : > { %v1031_v18 = vadd.f32 %v1030_v33, %v3526_v52  ;;  %v1182_v50 = vmax.f32 %v1027_v19, 0.0 }
 0x213   : > { %v1185_v49 = vmax.f32 %v1029_v17, 0.0 }
 0x214   : > { %v1186_v3 = vmax.f32 %v1031_v18, 0.0 }
 0x215   : > { %v1301_v4 = vpack.c.bf16 %v1185_v49, %v1181_v34 }
 0x216   : > { %v1302_v21 = vpack.c.bf16 %v1186_v3, %v1182_v50  ;;  %v1034_v22 = vpop.f32.mrb[76].mxu1 }
 0x217   : > { %v1035_v31 = vadd.f32 %v1034_v22, %v3523_v46  ;;  %v1036_v32 = vpop.f32.mrb[77].mxu1 }
 0x218   : > { %v1037_v36 = vadd.f32 %v1036_v32, %v3526_v52  ;;  %v1038_v37 = vpop.f32.mrb[78].mxu1  ;;  %1996 = vmatprep.mubr.bf16.mxu0 %v1302_v21 }
 0x219   : > { %v1039_v38 = vadd.f32 %v1038_v37, %v3523_v46  ;;  %v1040_v39 = vpop.f32.mrb[79].mxu1  ;;  %1997 = vmatmul.mubr.bf16.gmra.mrb[8].mxu0 %v1301_v4  ;;  %v1189_v43 = vmax.f32 %v1035_v31, 0.0 }
 0x21a   : > { %v1041_v41 = vadd.f32 %v1040_v39, %v3526_v52  ;;  %v1190_v44 = vmax.f32 %v1037_v36, 0.0 }
 0x21b   : > { %v1193_v27 = vmax.f32 %v1039_v38, 0.0 }
 0x21c   : > { %v1194_v28 = vmax.f32 %v1041_v41, 0.0 }
 0x21d   : > { %v1305_v45 = vpack.c.bf16 %v1193_v27, %v1189_v43 }
 0x21e   : > { %v1306_v47 = vpack.c.bf16 %v1194_v28, %v1190_v44  ;;  %v1044_v48 = vpop.f32.mrb[80].mxu1 }
 0x21f   : > { %v1045_v54 = vadd.f32 %v1044_v48, %v3523_v46  ;;  %v1046_v55 = vpop.f32.mrb[81].mxu1 }
 0x220   : > { %v1047_v56 = vadd.f32 %v1046_v55, %v3526_v52  ;;  %v1048_v57 = vpop.f32.mrb[82].mxu1  ;;  %2006 = vmatprep.mubr.bf16.mxu0 %v1306_v47 }
 0x221   : > { %v1049_v61 = vadd.f32 %v1048_v57, %v3523_v46  ;;  %v1050_v58 = vpop.f32.mrb[83].mxu1  ;;  %2007 = vmatmul.mubr.bf16.gmra.mrb[12].mxu0 %v1305_v45  ;;  %v1197_v63 = vmax.f32 %v1045_v54, 0.0 }
 0x222   : > { %v1051_v59 = vadd.f32 %v1050_v58, %v3526_v52  ;;  %v1198_v62 = vmax.f32 %v1047_v56, 0.0 }
 0x223   : > { %v1201_v60 = vmax.f32 %v1049_v61, 0.0 }
 0x224   : > { %v1202_v0 = vmax.f32 %v1051_v59, 0.0 }
 0x225   : > { %v1309_v1 = vpack.c.bf16 %v1201_v60, %v1197_v63 }
 0x226   : > { %v1310_v51 = vpack.c.bf16 %v1202_v0, %v1198_v62  ;;  %v1054_v35 = vpop.f32.mrb[84].mxu1 }
 0x227   : > { %v1055_v2 = vadd.f32 %v1054_v35, %v3523_v46  ;;  %v1056_v5 = vpop.f32.mrb[85].mxu1 }
 0x228   : > { %v1057_v8 = vadd.f32 %v1056_v5, %v3526_v52  ;;  %v1058_v9 = vpop.f32.mrb[86].mxu1  ;;  %2016 = vmatprep.mubr.bf16.mxu0 %v1310_v51 }
 0x229   : > { %v1059_v11 = vadd.f32 %v1058_v9, %v3523_v46  ;;  %v1060_v10 = vpop.f32.mrb[87].mxu1  ;;  %2017 = vmatmul.mubr.bf16.gmra.mrb[16].mxu0 %v1309_v1  ;;  %v1205_v13 = vmax.f32 %v1055_v2, 0.0 }
 0x22a   : > { %v1061_v12 = vadd.f32 %v1060_v10, %v3526_v52  ;;  %v1206_v16 = vmax.f32 %v1057_v8, 0.0 }
 0x22b   : > { %v1209_v14 = vmax.f32 %v1059_v11, 0.0 }
 0x22c   : > { %v1210_v23 = vmax.f32 %v1061_v12, 0.0 }
 0x22d   : > { %v1313_v24 = vpack.c.bf16 %v1209_v14, %v1205_v13 }
 0x22e   : > { %v1314_v25 = vpack.c.bf16 %v1210_v23, %v1206_v16  ;;  %v1064_v26 = vpop.f32.mrb[88].mxu1 }
 0x22f   : > { %v1065_v29 = vadd.f32 %v1064_v26, %v3523_v46  ;;  %v1066_v30 = vpop.f32.mrb[89].mxu1 }
 0x230   : > { %v1067_v15 = vadd.f32 %v1066_v30, %v3526_v52  ;;  %v1068_v6 = vpop.f32.mrb[90].mxu1  ;;  %2026 = vmatprep.mubr.bf16.mxu0 %v1314_v25 }
 0x231   : > { %v1069_v7 = vadd.f32 %v1068_v6, %v3523_v46  ;;  %v1070_v19 = vpop.f32.mrb[91].mxu1  ;;  %2027 = vmatmul.mubr.bf16.gmra.mrb[20].mxu0 %v1313_v24  ;;  %v1213_v17 = vmax.f32 %v1065_v29, 0.0 }
 0x232   : > { %v1071_v20 = vadd.f32 %v1070_v19, %v3526_v52  ;;  %v1214_v18 = vmax.f32 %v1067_v15, 0.0 }
 0x233   : > { %v1217_v33 = vmax.f32 %v1069_v7, 0.0 }
 0x234   : > { %v1218_v34 = vmax.f32 %v1071_v20, 0.0 }
 0x235   : > { %v1317_v49 = vpack.c.bf16 %v1217_v33, %v1213_v17 }
 0x236   : > { %v1318_v50 = vpack.c.bf16 %v1218_v34, %v1214_v18  ;;  %v1074_v3 = vpop.f32.mrb[92].mxu1 }
 0x237   : > { %v1075_v4 = vadd.f32 %v1074_v3, %v3523_v46  ;;  %v1076_v21 = vpop.f32.mrb[93].mxu1 }
 0x238   : > { %v1077_v22 = vadd.f32 %v1076_v21, %v3526_v52  ;;  %v1078_v31 = vpop.f32.mrb[94].mxu1  ;;  %2036 = vmatprep.mubr.bf16.mxu0 %v1318_v50 }
 0x239   : > { %v1079_v32 = vadd.f32 %v1078_v31, %v3523_v46  ;;  %v1080_v36 = vpop.f32.mrb[95].mxu1  ;;  %2037 = vmatmul.mubr.bf16.gmra.mrb[24].mxu0 %v1317_v49  ;;  %v1221_v38 = vmax.f32 %v1075_v4, 0.0 }
 0x23a   : > { %v1081_v37 = vadd.f32 %v1080_v36, %v3526_v52  ;;  %v1222_v41 = vmax.f32 %v1077_v22, 0.0 }
 0x23b   : > { %v1225_v39 = vmax.f32 %v1079_v32, 0.0 }
 0x23c   : > { %v1226_v43 = vmax.f32 %v1081_v37, 0.0 }
 0x23d   : > { %v1321_v27 = vpack.c.bf16 %v1225_v39, %v1221_v38 }
 0x23e   : > { %v1322_v44 = vpack.c.bf16 %v1226_v43, %v1222_v41  ;;  %v1084_v28 = vpop.f32.mrb[96].mxu1 }
 0x23f   : > { %v1085_v45 = vadd.f32 %v1084_v28, %v3523_v46  ;;  %v1086_v47 = vpop.f32.mrb[97].mxu1 }
 0x240   : > { %v1087_v48 = vadd.f32 %v1086_v47, %v3526_v52  ;;  %v1088_v54 = vpop.f32.mrb[98].mxu1  ;;  %2046 = vmatprep.mubr.bf16.mxu0 %v1322_v44 }
 0x241   : > { %v1089_v55 = vadd.f32 %v1088_v54, %v3523_v46  ;;  %v1090_v56 = vpop.f32.mrb[99].mxu1  ;;  %2047 = vmatmul.mubr.bf16.gmra.mrb[28].mxu0 %v1321_v27  ;;  %v1229_v61 = vmax.f32 %v1085_v45, 0.0 }
 0x242   : > { %v1091_v57 = vadd.f32 %v1090_v56, %v3526_v52  ;;  %v1230_v59 = vmax.f32 %v1087_v48, 0.0 }
 0x243   : > { %v1233_v58 = vmax.f32 %v1089_v55, 0.0 }
 0x244   : > { %v1234_v63 = vmax.f32 %v1091_v57, 0.0 }
 0x245   : > { %v1325_v60 = vpack.c.bf16 %v1233_v58, %v1229_v61 }
 0x246   : > { %v1326_v62 = vpack.c.bf16 %v1234_v63, %v1230_v59  ;;  %v1094_v0 = vpop.f32.mrb[100].mxu1 }
 0x247   : > { %v1095_v1 = vadd.f32 %v1094_v0, %v3523_v46  ;;  %v1096_v51 = vpop.f32.mrb[101].mxu1 }
 0x248   : > { %v1097_v35 = vadd.f32 %v1096_v51, %v3526_v52  ;;  %v1098_v2 = vpop.f32.mrb[102].mxu1  ;;  %2056 = vmatprep.mubr.bf16.mxu0 %v1326_v62 }
 0x249   : > { %v1099_v5 = vadd.f32 %v1098_v2, %v3523_v46  ;;  %v1100_v8 = vpop.f32.mrb[103].mxu1  ;;  %2057 = vmatmul.mubr.bf16.gmra.mrb[32].mxu0 %v1325_v60  ;;  %v1237_v11 = vmax.f32 %v1095_v1, 0.0 }
 0x24a   : > { %v1101_v9 = vadd.f32 %v1100_v8, %v3526_v52  ;;  %v1238_v12 = vmax.f32 %v1097_v35, 0.0 }
 0x24b   : > { %v1241_v10 = vmax.f32 %v1099_v5, 0.0 }
 0x24c   : > { %v1242_v13 = vmax.f32 %v1101_v9, 0.0 }
 0x24d   : > { %v1329_v14 = vpack.c.bf16 %v1241_v10, %v1237_v11 }
 0x24e   : > { %v1330_v16 = vpack.c.bf16 %v1242_v13, %v1238_v12  ;;  %v1104_v23 = vpop.f32.mrb[104].mxu1 }
 0x24f   : > { %v1105_v24 = vadd.f32 %v1104_v23, %v3523_v46  ;;  %v1106_v25 = vpop.f32.mrb[105].mxu1 }
 0x250   : > { %v1107_v26 = vadd.f32 %v1106_v25, %v3526_v52  ;;  %v1108_v29 = vpop.f32.mrb[106].mxu1  ;;  %2066 = vmatprep.mubr.bf16.mxu0 %v1330_v16 }
 0x251   : > { %v1109_v30 = vadd.f32 %v1108_v29, %v3523_v46  ;;  %v1110_v15 = vpop.f32.mrb[107].mxu1  ;;  %2067 = vmatmul.mubr.bf16.gmra.mrb[36].mxu0 %v1329_v14  ;;  %v1245_v7 = vmax.f32 %v1105_v24, 0.0 }
 0x252   : > { %v1111_v6 = vadd.f32 %v1110_v15, %v3526_v52  ;;  %v1246_v20 = vmax.f32 %v1107_v26, 0.0 }
 0x253   : > { %v1249_v19 = vmax.f32 %v1109_v30, 0.0 }
 0x254   : > { %v1250_v17 = vmax.f32 %v1111_v6, 0.0 }
 0x255   : > { %v1333_v33 = vpack.c.bf16 %v1249_v19, %v1245_v7 }
 0x256   : > { %v1334_v18 = vpack.c.bf16 %v1250_v17, %v1246_v20  ;;  %v1114_v34 = vpop.f32.mrb[108].mxu1 }
 0x257   : > { %v1115_v49 = vadd.f32 %v1114_v34, %v3523_v46  ;;  %v1116_v50 = vpop.f32.mrb[109].mxu1 }
 0x258   : > { %v1117_v3 = vadd.f32 %v1116_v50, %v3526_v52  ;;  %v1118_v4 = vpop.f32.mrb[110].mxu1  ;;  %2076 = vmatprep.mubr.bf16.mxu0 %v1334_v18 }
 0x259   : > { %v1119_v21 = vadd.f32 %v1118_v4, %v3523_v46  ;;  %v1120_v22 = vpop.f32.mrb[111].mxu1  ;;  %2077 = vmatmul.mubr.bf16.gmra.mrb[40].mxu0 %v1333_v33  ;;  %v1253_v32 = vmax.f32 %v1115_v49, 0.0 }
 0x25a   : > { %v1121_v31 = vadd.f32 %v1120_v22, %v3526_v52  ;;  %v1254_v37 = vmax.f32 %v1117_v3, 0.0 }
 0x25b   : > { %v1257_v36 = vmax.f32 %v1119_v21, 0.0 }
 0x25c   : > { %v1258_v38 = vmax.f32 %v1121_v31, 0.0 }
 0x25d   : > { %v1337_v39 = vpack.c.bf16 %v1257_v36, %v1253_v32 }
 0x25e   : > { %v1338_v41 = vpack.c.bf16 %v1258_v38, %v1254_v37  ;;  %v1124_v43 = vpop.f32.mrb[112].mxu1  ;;  %v1419_v38 = vld [vmem:[%s3790_s4] sm:$0x3] }
 0x25f   : > { %v1125_v27 = vadd.f32 %v1124_v43, %v3523_v46  ;;  %v1126_v44 = vpop.f32.mrb[113].mxu1 }
 0x260   : > { %v1127_v28 = vadd.f32 %v1126_v44, %v3526_v52  ;;  %v1128_v45 = vpop.f32.mrb[114].mxu1  ;;  %2086 = vmatprep.mubr.bf16.mxu0 %v1338_v41 }
 0x261   : > { %v1129_v47 = vadd.f32 %v1128_v45, %v3523_v46  ;;  %v1130_v48 = vpop.f32.mrb[115].mxu1  ;;  %2087 = vmatmul.mubr.bf16.gmra.mrb[44].mxu0 %v1337_v39  ;;  %v1261_v55 = vmax.f32 %v1125_v27, 0.0 }
 0x262   : > { %v1131_v54 = vadd.f32 %v1130_v48, %v3526_v52  ;;  %v1262_v57 = vmax.f32 %v1127_v28, 0.0 }
 0x263   : > { %v1265_v56 = vmax.f32 %v1129_v47, 0.0 }
 0x264   : > { %v1266_v61 = vmax.f32 %v1131_v54, 0.0 }
 0x265   : > { %v1341_v58 = vpack.c.bf16 %v1265_v56, %v1261_v55 }
 0x266   : > { %v1342_v59 = vpack.c.bf16 %v1266_v61, %v1262_v57  ;;  %v1134_v63 = vpop.f32.mrb[116].mxu1 }
 0x267   : > { %v1135_v60 = vadd.f32 %v1134_v63, %v3523_v46  ;;  %v1136_v62 = vpop.f32.mrb[117].mxu1 }
 0x268   : > { %v1137_v0 = vadd.f32 %v1136_v62, %v3526_v52  ;;  %v1138_v1 = vpop.f32.mrb[118].mxu1  ;;  %2096 = vmatprep.mubr.bf16.mxu0 %v1342_v59 }
 0x269   : > { %v1139_v51 = vadd.f32 %v1138_v1, %v3523_v46  ;;  %v1140_v35 = vpop.f32.mrb[119].mxu1  ;;  %2097 = vmatmul.mubr.bf16.gmra.mrb[48].mxu0 %v1341_v58  ;;  %v1269_v5 = vmax.f32 %v1135_v60, 0.0 }
 0x26a   : > { %v1141_v2 = vadd.f32 %v1140_v35, %v3526_v52  ;;  %v1270_v9 = vmax.f32 %v1137_v0, 0.0 }
 0x26b   : > { %v1273_v8 = vmax.f32 %v1139_v51, 0.0 }
 0x26c   : > { %v1274_v11 = vmax.f32 %v1141_v2, 0.0 }
 0x26d   : > { %v1345_v10 = vpack.c.bf16 %v1273_v8, %v1269_v5 }
 0x26e   : > { %v1346_v12 = vpack.c.bf16 %v1274_v11, %v1270_v9  ;;  %v1144_v13 = vpop.f32.mrb[120].mxu1 }
 0x26f   : > { %v1145_v14 = vadd.f32 %v1144_v13, %v3523_v46  ;;  %v1146_v16 = vpop.f32.mrb[121].mxu1 }
 0x270   : > { %v1147_v23 = vadd.f32 %v1146_v16, %v3526_v52  ;;  %v1148_v24 = vpop.f32.mrb[122].mxu1  ;;  %2106 = vmatprep.mubr.bf16.mxu0 %v1346_v12 }
 0x271   : > { %v1149_v25 = vadd.f32 %v1148_v24, %v3523_v46  ;;  %v1150_v26 = vpop.f32.mrb[123].mxu1  ;;  %2107 = vmatmul.mubr.bf16.gmra.mrb[52].mxu0 %v1345_v10  ;;  %v1277_v30 = vmax.f32 %v1145_v14, 0.0 }
 0x272   : > { %v1151_v29 = vadd.f32 %v1150_v26, %v3526_v52  ;;  %v1278_v6 = vmax.f32 %v1147_v23, 0.0 }
 0x273   : > { %v1281_v15 = vmax.f32 %v1149_v25, 0.0 }
 0x274   : > { %v1282_v7 = vmax.f32 %v1151_v29, 0.0 }
 0x275   : > { %v1349_v19 = vpack.c.bf16 %v1281_v15, %v1277_v30 }
 0x276   : > { %v1350_v20 = vpack.c.bf16 %v1282_v7, %v1278_v6  ;;  %v1154_v17 = vpop.f32.mrb[124].mxu1 }
 0x277   : > { %v1155_v33 = vadd.f32 %v1154_v17, %v3523_v46  ;;  %v1156_v18 = vpop.f32.mrb[125].mxu1 }
 0x278   : > { %v1157_v34 = vadd.f32 %v1156_v18, %v3526_v52  ;;  %v1158_v49 = vpop.f32.mrb[126].mxu1  ;;  %2116 = vmatprep.mubr.bf16.mxu0 %v1350_v20 }
 0x279   : > { %v1159_v50 = vadd.f32 %v1158_v49, %v3523_v46  ;;  %v1160_v3 = vpop.f32.mrb[127].mxu1  ;;  %2117 = vmatmul.mubr.bf16.gmra.mrb[56].mxu0 %v1349_v19  ;;  %v1285_v21 = vmax.f32 %v1155_v33, 0.0  ;;  %v3597_v46 = vrot.slane %v1419_v38, %v439_v42 }
 0x27a   : > { %v1161_v4 = vadd.f32 %v1160_v3, %v3526_v52  ;;  %v1286_v31 = vmax.f32 %v1157_v34, 0.0  ;;  %v3601_v52 = vrot.slane %v1419_v38, %v443_v53 }
 0x27b   : > { %v1289_v22 = vmax.f32 %v1159_v50, 0.0 }
 0x27c   : > { %v1290_v32 = vmax.f32 %v1161_v4, 0.0 }
 0x27d   : > { %v1353_v36 = vpack.c.bf16 %v1289_v22, %v1285_v21 }
 0x27e   : > { %v1354_v37 = vpack.c.bf16 %v1290_v32, %v1286_v31 }
 0x280   : > { %2126 = vmatprep.mubr.bf16.mxu0 %v1354_v37 }
 0x281   : > { %2127 = vmatmul.mubr.bf16.gmra.mrb[60].mxu0 %v1353_v36 }
 0x2dc   : > { %v1978_v39 = vpop.f32.mrb[0].mxu0 }
 0x2dd   : > { %v2460_v41 = vadd.f32 %v1978_v39, %v3597_v46  ;;  %v1980_v43 = vpop.f32.mrb[1].mxu0 }
 0x2de   : > { %v2461_v27 = vadd.f32 %v1980_v43, %v3601_v52  ;;  %v1982_v44 = vpop.f32.mrb[2].mxu0 }
 0x2df   : > { %2137 = vst [vmem:[%s3607_s28] sm:$0xff] %v2460_v41  ;;  %v2462_v40 = vadd.f32 %v1982_v44, %v3597_v46  ;;  %v1984_v42 = vpop.f32.mrb[3].mxu0 }
 0x2e0   : > { %2138 = vst [vmem:[%s3607_s28 + $0x8] sm:$0xff] %v2461_v27  ;;  %v2463_v53 = vadd.f32 %v1984_v42, %v3601_v52 }
 0x2e1   : > { %2139 = vst [vmem:[%s3607_s28 + $0x10] sm:$0xff] %v2462_v40 }
 0x2e2   : > { %2140 = vst [vmem:[%s3607_s28 + $0x18] sm:$0xff] %v2463_v53 }
 0x2e4   : > { %v1988_v28 = vpop.f32.mrb[4].mxu0 }
 0x2e5   : > { %v2464_v45 = vadd.f32 %v1988_v28, %v3597_v46  ;;  %v1990_v47 = vpop.f32.mrb[5].mxu0 }
 0x2e6   : > { %v2465_v48 = vadd.f32 %v1990_v47, %v3601_v52  ;;  %v1992_v54 = vpop.f32.mrb[6].mxu0 }
 0x2e7   : > { %2141 = vst [vmem:[%s3607_s28 + $0x20] sm:$0xff] %v2464_v45  ;;  %v2466_v55 = vadd.f32 %v1992_v54, %v3597_v46  ;;  %v1994_v56 = vpop.f32.mrb[7].mxu0 }
 0x2e8   : > { %2142 = vst [vmem:[%s3607_s28 + $0x28] sm:$0xff] %v2465_v48  ;;  %v2467_v57 = vadd.f32 %v1994_v56, %v3601_v52 }
 0x2e9   : > { %2143 = vst [vmem:[%s3607_s28 + $0x30] sm:$0xff] %v2466_v55 }
 0x2ea   : > { %2144 = vst [vmem:[%s3607_s28 + $0x38] sm:$0xff] %v2467_v57 }
 0x2ec   : > { %v1998_v61 = vpop.f32.mrb[8].mxu0 }
 0x2ed   : > { %v2468_v58 = vadd.f32 %v1998_v61, %v3597_v46  ;;  %v2000_v59 = vpop.f32.mrb[9].mxu0 }
 0x2ee   : > { %v2469_v63 = vadd.f32 %v2000_v59, %v3601_v52  ;;  %v2002_v60 = vpop.f32.mrb[10].mxu0 }
 0x2ef   : > { %2145 = vst [vmem:[%s3607_s28 + $0x40] sm:$0xff] %v2468_v58  ;;  %v2470_v62 = vadd.f32 %v2002_v60, %v3597_v46  ;;  %v2004_v0 = vpop.f32.mrb[11].mxu0 }
 0x2f0   : > { %2146 = vst [vmem:[%s3607_s28 + $0x48] sm:$0xff] %v2469_v63  ;;  %v2471_v1 = vadd.f32 %v2004_v0, %v3601_v52 }
 0x2f1   : > { %2147 = vst [vmem:[%s3607_s28 + $0x50] sm:$0xff] %v2470_v62 }
 0x2f2   : > { %2148 = vst [vmem:[%s3607_s28 + $0x58] sm:$0xff] %v2471_v1 }
 0x2f4   : > { %v2008_v51 = vpop.f32.mrb[12].mxu0 }
 0x2f5   : > { %v2472_v35 = vadd.f32 %v2008_v51, %v3597_v46  ;;  %v2010_v2 = vpop.f32.mrb[13].mxu0 }
 0x2f6   : > { %v2473_v5 = vadd.f32 %v2010_v2, %v3601_v52  ;;  %v2012_v8 = vpop.f32.mrb[14].mxu0 }
 0x2f7   : > { %2149 = vst [vmem:[%s3607_s28 + $0x60] sm:$0xff] %v2472_v35  ;;  %v2474_v9 = vadd.f32 %v2012_v8, %v3597_v46  ;;  %v2014_v11 = vpop.f32.mrb[15].mxu0 }
 0x2f8   : > { %2150 = vst [vmem:[%s3607_s28 + $0x68] sm:$0xff] %v2473_v5  ;;  %v2475_v10 = vadd.f32 %v2014_v11, %v3601_v52 }
 0x2f9   : > { %2151 = vst [vmem:[%s3607_s28 + $0x70] sm:$0xff] %v2474_v9 }
 0x2fa   : > { %2152 = vst [vmem:[%s3607_s28 + $0x78] sm:$0xff] %v2475_v10 }
 0x2fc   : > { %v2018_v12 = vpop.f32.mrb[16].mxu0 }
 0x2fd   : > { %v2476_v13 = vadd.f32 %v2018_v12, %v3597_v46  ;;  %v2020_v14 = vpop.f32.mrb[17].mxu0 }
 0x2fe   : > { %v2477_v16 = vadd.f32 %v2020_v14, %v3601_v52  ;;  %v2022_v23 = vpop.f32.mrb[18].mxu0 }
 0x2ff   : > { %2153 = vst [vmem:[%s3607_s28 + $0x80] sm:$0xff] %v2476_v13  ;;  %v2478_v24 = vadd.f32 %v2022_v23, %v3597_v46  ;;  %v2024_v25 = vpop.f32.mrb[19].mxu0 }
 0x300   : > { %2154 = vst [vmem:[%s3607_s28 + $0x88] sm:$0xff] %v2477_v16  ;;  %v2479_v26 = vadd.f32 %v2024_v25, %v3601_v52 }
 0x301   : > { %2155 = vst [vmem:[%s3607_s28 + $0x90] sm:$0xff] %v2478_v24 }
 0x302   : > { %2156 = vst [vmem:[%s3607_s28 + $0x98] sm:$0xff] %v2479_v26 }
 0x304   : > { %v2028_v29 = vpop.f32.mrb[20].mxu0 }
 0x305   : > { %v2480_v30 = vadd.f32 %v2028_v29, %v3597_v46  ;;  %v2030_v15 = vpop.f32.mrb[21].mxu0 }
 0x306   : > { %v2481_v6 = vadd.f32 %v2030_v15, %v3601_v52  ;;  %v2032_v7 = vpop.f32.mrb[22].mxu0 }
 0x307   : > { %2157 = vst [vmem:[%s3607_s28 + $0xa0] sm:$0xff] %v2480_v30  ;;  %v2482_v19 = vadd.f32 %v2032_v7, %v3597_v46  ;;  %v2034_v20 = vpop.f32.mrb[23].mxu0 }
 0x308   : > { %2158 = vst [vmem:[%s3607_s28 + $0xa8] sm:$0xff] %v2481_v6  ;;  %v2483_v17 = vadd.f32 %v2034_v20, %v3601_v52 }
 0x309   : > { %2159 = vst [vmem:[%s3607_s28 + $0xb0] sm:$0xff] %v2482_v19 }
 0x30a   : > { %2160 = vst [vmem:[%s3607_s28 + $0xb8] sm:$0xff] %v2483_v17 }
 0x30c   : > { %v2038_v33 = vpop.f32.mrb[24].mxu0 }
 0x30d   : > { %v2484_v18 = vadd.f32 %v2038_v33, %v3597_v46  ;;  %v2040_v34 = vpop.f32.mrb[25].mxu0 }
 0x30e   : > { %v2485_v49 = vadd.f32 %v2040_v34, %v3601_v52  ;;  %v2042_v50 = vpop.f32.mrb[26].mxu0 }
 0x30f   : > { %2161 = vst [vmem:[%s3607_s28 + $0xc0] sm:$0xff] %v2484_v18  ;;  %v2486_v3 = vadd.f32 %v2042_v50, %v3597_v46  ;;  %v2044_v4 = vpop.f32.mrb[27].mxu0 }
 0x310   : > { %2162 = vst [vmem:[%s3607_s28 + $0xc8] sm:$0xff] %v2485_v49  ;;  %v2487_v21 = vadd.f32 %v2044_v4, %v3601_v52 }
 0x311   : > { %2163 = vst [vmem:[%s3607_s28 + $0xd0] sm:$0xff] %v2486_v3 }
 0x312   : > { %2164 = vst [vmem:[%s3607_s28 + $0xd8] sm:$0xff] %v2487_v21 }
 0x314   : > { %v2048_v22 = vpop.f32.mrb[28].mxu0 }
 0x315   : > { %v2488_v31 = vadd.f32 %v2048_v22, %v3597_v46  ;;  %v2050_v32 = vpop.f32.mrb[29].mxu0 }
 0x316   : > { %v2489_v36 = vadd.f32 %v2050_v32, %v3601_v52  ;;  %v2052_v37 = vpop.f32.mrb[30].mxu0 }
 0x317   : > { %2165 = vst [vmem:[%s3607_s28 + $0xe0] sm:$0xff] %v2488_v31  ;;  %v2490_v38 = vadd.f32 %v2052_v37, %v3597_v46  ;;  %v2054_v39 = vpop.f32.mrb[31].mxu0 }
 0x318   : > { %2166 = vst [vmem:[%s3607_s28 + $0xe8] sm:$0xff] %v2489_v36  ;;  %v2491_v41 = vadd.f32 %v2054_v39, %v3601_v52 }
 0x319   : > { %2167 = vst [vmem:[%s3607_s28 + $0xf0] sm:$0xff] %v2490_v38 }
 0x31a   : > { %2168 = vst [vmem:[%s3607_s28 + $0xf8] sm:$0xff] %v2491_v41 }
 0x31c   : > { %v2058_v43 = vpop.f32.mrb[32].mxu0 }
 0x31d   : > { %v2492_v27 = vadd.f32 %v2058_v43, %v3597_v46  ;;  %v2060_v44 = vpop.f32.mrb[33].mxu0 }
 0x31e   : > { %v2493_v40 = vadd.f32 %v2060_v44, %v3601_v52  ;;  %v2062_v42 = vpop.f32.mrb[34].mxu0 }
 0x31f   : > { %2169 = vst [vmem:[%s3607_s28 + $0x100] sm:$0xff] %v2492_v27  ;;  %v2494_v53 = vadd.f32 %v2062_v42, %v3597_v46  ;;  %v2064_v28 = vpop.f32.mrb[35].mxu0 }
 0x320   : > { %2170 = vst [vmem:[%s3607_s28 + $0x108] sm:$0xff] %v2493_v40  ;;  %v2495_v45 = vadd.f32 %v2064_v28, %v3601_v52 }
 0x321   : > { %2171 = vst [vmem:[%s3607_s28 + $0x110] sm:$0xff] %v2494_v53 }
 0x322   : > { %2172 = vst [vmem:[%s3607_s28 + $0x118] sm:$0xff] %v2495_v45 }
 0x324   : > { %v2068_v47 = vpop.f32.mrb[36].mxu0 }
 0x325   : > { %v2496_v48 = vadd.f32 %v2068_v47, %v3597_v46  ;;  %v2070_v54 = vpop.f32.mrb[37].mxu0 }
 0x326   : > { %v2497_v55 = vadd.f32 %v2070_v54, %v3601_v52  ;;  %v2072_v56 = vpop.f32.mrb[38].mxu0 }
 0x327   : > { %2173 = vst [vmem:[%s3607_s28 + $0x120] sm:$0xff] %v2496_v48  ;;  %v2498_v57 = vadd.f32 %v2072_v56, %v3597_v46  ;;  %v2074_v61 = vpop.f32.mrb[39].mxu0 }
 0x328   : > { %2174 = vst [vmem:[%s3607_s28 + $0x128] sm:$0xff] %v2497_v55  ;;  %v2499_v58 = vadd.f32 %v2074_v61, %v3601_v52 }
 0x329   : > { %2175 = vst [vmem:[%s3607_s28 + $0x130] sm:$0xff] %v2498_v57 }
 0x32a   : > { %2176 = vst [vmem:[%s3607_s28 + $0x138] sm:$0xff] %v2499_v58 }
 0x32c   : > { %v2078_v59 = vpop.f32.mrb[40].mxu0 }
 0x32d   : > { %v2500_v63 = vadd.f32 %v2078_v59, %v3597_v46  ;;  %v2080_v60 = vpop.f32.mrb[41].mxu0 }
 0x32e   : > { %v2501_v62 = vadd.f32 %v2080_v60, %v3601_v52  ;;  %v2082_v0 = vpop.f32.mrb[42].mxu0 }
 0x32f   : > { %2177 = vst [vmem:[%s3607_s28 + $0x140] sm:$0xff] %v2500_v63  ;;  %v2502_v1 = vadd.f32 %v2082_v0, %v3597_v46  ;;  %v2084_v51 = vpop.f32.mrb[43].mxu0 }
 0x330   : > { %2178 = vst [vmem:[%s3607_s28 + $0x148] sm:$0xff] %v2501_v62  ;;  %v2503_v35 = vadd.f32 %v2084_v51, %v3601_v52 }
 0x331   : > { %2179 = vst [vmem:[%s3607_s28 + $0x150] sm:$0xff] %v2502_v1 }
 0x332   : > { %2180 = vst [vmem:[%s3607_s28 + $0x158] sm:$0xff] %v2503_v35 }
 0x334   : > { %v2088_v2 = vpop.f32.mrb[44].mxu0 }
 0x335   : > { %v2504_v5 = vadd.f32 %v2088_v2, %v3597_v46  ;;  %v2090_v8 = vpop.f32.mrb[45].mxu0 }
 0x336   : > { %v2505_v9 = vadd.f32 %v2090_v8, %v3601_v52  ;;  %v2092_v11 = vpop.f32.mrb[46].mxu0 }
 0x337   : > { %2181 = vst [vmem:[%s3607_s28 + $0x160] sm:$0xff] %v2504_v5  ;;  %v2506_v10 = vadd.f32 %v2092_v11, %v3597_v46  ;;  %v2094_v12 = vpop.f32.mrb[47].mxu0 }
 0x338   : > { %2182 = vst [vmem:[%s3607_s28 + $0x168] sm:$0xff] %v2505_v9  ;;  %v2507_v13 = vadd.f32 %v2094_v12, %v3601_v52 }
 0x339   : > { %2183 = vst [vmem:[%s3607_s28 + $0x170] sm:$0xff] %v2506_v10 }
 0x33a   : > { %2184 = vst [vmem:[%s3607_s28 + $0x178] sm:$0xff] %v2507_v13 }
 0x33c   : > { %v2098_v14 = vpop.f32.mrb[48].mxu0 }
 0x33d   : > { %v2508_v16 = vadd.f32 %v2098_v14, %v3597_v46  ;;  %v2100_v23 = vpop.f32.mrb[49].mxu0 }
 0x33e   : > { %v2509_v24 = vadd.f32 %v2100_v23, %v3601_v52  ;;  %v2102_v25 = vpop.f32.mrb[50].mxu0 }
 0x33f   : > { %2185 = vst [vmem:[%s3607_s28 + $0x180] sm:$0xff] %v2508_v16  ;;  %v2510_v26 = vadd.f32 %v2102_v25, %v3597_v46  ;;  %v2104_v29 = vpop.f32.mrb[51].mxu0 }
 0x340   : > { %2186 = vst [vmem:[%s3607_s28 + $0x188] sm:$0xff] %v2509_v24  ;;  %v2511_v30 = vadd.f32 %v2104_v29, %v3601_v52 }
 0x341   : > { %2187 = vst [vmem:[%s3607_s28 + $0x190] sm:$0xff] %v2510_v26 }
 0x342   : > { %2188 = vst [vmem:[%s3607_s28 + $0x198] sm:$0xff] %v2511_v30 }
 0x344   : > { %v2108_v15 = vpop.f32.mrb[52].mxu0 }
 0x345   : > { %v2512_v6 = vadd.f32 %v2108_v15, %v3597_v46  ;;  %v2110_v7 = vpop.f32.mrb[53].mxu0 }
 0x346   : > { %v2513_v19 = vadd.f32 %v2110_v7, %v3601_v52  ;;  %v2112_v20 = vpop.f32.mrb[54].mxu0 }
 0x347   : > { %2189 = vst [vmem:[%s3607_s28 + $0x1a0] sm:$0xff] %v2512_v6  ;;  %v2514_v17 = vadd.f32 %v2112_v20, %v3597_v46  ;;  %v2114_v33 = vpop.f32.mrb[55].mxu0 }
 0x348   : > { %2190 = vst [vmem:[%s3607_s28 + $0x1a8] sm:$0xff] %v2513_v19  ;;  %v2515_v18 = vadd.f32 %v2114_v33, %v3601_v52 }
 0x349   : > { %2191 = vst [vmem:[%s3607_s28 + $0x1b0] sm:$0xff] %v2514_v17 }
 0x34a   : > { %2192 = vst [vmem:[%s3607_s28 + $0x1b8] sm:$0xff] %v2515_v18 }
 0x34c   : > { %v2118_v34 = vpop.f32.mrb[56].mxu0 }
 0x34d   : > { %v2516_v49 = vadd.f32 %v2118_v34, %v3597_v46  ;;  %v2120_v50 = vpop.f32.mrb[57].mxu0 }
 0x34e   : > { %v2517_v3 = vadd.f32 %v2120_v50, %v3601_v52  ;;  %v2122_v4 = vpop.f32.mrb[58].mxu0 }
 0x34f   : > { %2193 = vst [vmem:[%s3607_s28 + $0x1c0] sm:$0xff] %v2516_v49  ;;  %v2518_v21 = vadd.f32 %v2122_v4, %v3597_v46  ;;  %v2124_v22 = vpop.f32.mrb[59].mxu0 }
 0x350   : > { %2194 = vst [vmem:[%s3607_s28 + $0x1c8] sm:$0xff] %v2517_v3  ;;  %v2519_v31 = vadd.f32 %v2124_v22, %v3601_v52 }
 0x351   : > { %2195 = vst [vmem:[%s3607_s28 + $0x1d0] sm:$0xff] %v2518_v21 }
 0x352   : > { %2196 = vst [vmem:[%s3607_s28 + $0x1d8] sm:$0xff] %v2519_v31 }
 0x354   : > { %v2128_v32 = vpop.f32.mrb[60].mxu0 }
 0x355   : > { %v2520_v36 = vadd.f32 %v2128_v32, %v3597_v46  ;;  %v2130_v37 = vpop.f32.mrb[61].mxu0 }
 0x356   : > { %v2521_v38 = vadd.f32 %v2130_v37, %v3601_v52  ;;  %v2132_v39 = vpop.f32.mrb[62].mxu0 }
 0x357   : > { %2197 = vst [vmem:[%s3607_s28 + $0x1e0] sm:$0xff] %v2520_v36  ;;  %v2522_v41 = vadd.f32 %v2132_v39, %v3597_v46  ;;  %v2134_v43 = vpop.f32.mrb[63].mxu0 }
 0x358   : > { %2198 = vst [vmem:[%s3607_s28 + $0x1e8] sm:$0xff] %v2521_v38  ;;  %v2523_v27 = vadd.f32 %v2134_v43, %v3601_v52 }
 0x359   : > { %2199 = vst [vmem:[%s3607_s28 + $0x1f0] sm:$0xff] %v2522_v41 }
 0x35a   : > { %2200 = vst [vmem:[%s3607_s28 + $0x1f8] sm:$0xff] %v2523_v27 }
 0x35b   : > { %2952 = shalt.err (!%p2949_p1)
}
 0x35c   : > { %s2953_s14 = scalar_lea.hbm %s3736_s12, 8192  ;;  %s2957_s15 = scalar_lea.hbm %s3791_s5, 16384 }
 0x35d   : > { %p2954_p13 = scmp.ne.s32.totalorder %s3736_s12, %s2953_s14  ;;  %p2958_p4 = scmp.lt.u32.totalorder %s3736_s12, %s3791_s5 }
 0x35e   : > { %p2959_p7 = scmp.lt.u32.totalorder %s2957_s15, %s2953_s14  ;;  %p2961_p11 = scmp.lt.u32.totalorder %s2953_s14, %s3736_s12 }
 0x35f   : > { %p2955_p6 = pnand %p2954_p13, %p3805_p0 }
 0x360   : > { %p2960_p8 = por %p2959_p7, %p2958_p4 }
 0x361   : > { %p2956_p10 = pneg %p2955_p6 }
 0x362   : > { %p2962_p2 = por %p2961_p11, %p2960_p8 }
 0x364   : > { %p2963_p3 = pnand %p2962_p2, %p2956_p10 }
 0x366   : > { %2966 = shalt.err (!%p2963_p3)
}
 0x367   : > { %s3019_s13 = smov 256   ;;  %s3020_s11 = smov 16  }
 0x368   : > { %2598 = dma.vmem_to_hbm [thread:$0]  (%p3805_p0), %s3738_s17, 8192, %s3736_s12, %s2202_s22, %s3019_s13, %s3019_s13, %s3020_s11  }
 0x369 PF: > { %s2231_s29 = sand.u32 1, %s2997_s18   ;;  %p3806_p5 = scmp.ne.s32.totalorder %s3796_s25, 0 }
 0x36a   : > { %p3807_p9 = scmp.ge.s32.totalorder %s3009_s21, 2  ;;  %s2232_s30 = scalar_lea.sflag [#allocation4], %s2231_s29 }
 0x36c   : > { %p2612_p12 = pnand %p3807_p9, %p3806_p5 }
 0x36e   : > { %2992 = dma.done.wait (!%p2612_p12), %s2232_s30, 8192  }
 0x36f   : > { %2994 = vsyncadd (!%p2612_p12), %s2232_s30, 4294959104  ;;  %p19_p1 = scmp.ge.s32.totalorder %s3164_s23, 4   ;;  %s3808_s18 = smov %s3001_s19 }
 0x370   : > { %s3809_s19 = smov %s3005_s20  ;;  %s3810_s20 = smov %s3173_s7 }
 0x371   : > { %s3811_s21 = smov %s3164_s23  ;;  %21 = sbr.rel (!%p19_p1) target bundleno = 6 (0x6), region = 93 }
 0x378   :  { %2237 = vsyncpa [#allocation3], 1 }
 0x379   :  { %2239 = vsyncpa [#allocation3 + $0x1], 1 }
 0x37a   :  { %2240 = vsyncpa [#allocation6], 1 }
 0x37b   :  { %2241 = vsyncpa [#allocation4], 1 }
 0x37c   :  { %2243 = vsyncpa [#allocation4 + $0x1], 1 }

</bundles_post_ra>
